<compile_context>
chip_gen: v7x
topology: tpu7x:2x2x1
jax: 0.10.0
libtpu: 0.0.40
codegen_flags: <defaults>
</compile_context>

<pallas_src>
import functools

import jax
import jax.numpy as jnp
from jax.experimental import pallas as pl
from jax.experimental.pallas import tpu as pltpu


def _window_attn_kernel(x1_ref, x2_ref, wq_ref, bq_ref, wkv_ref, bkv_ref,
                        bias_ref, wp_ref, bp_ref, o_ref, *, scale, num_heads):
    # x1_ref / x2_ref : [TB, N, C]   (TB windows per grid step)
    # wq_ref          : [C, C]    bq_ref : [1, C]
    # wkv_ref         : [C, 2C]   bkv_ref: [1, 2C]
    # bias_ref        : [nH, N, N]  relative position bias (pre-gathered)
    # wp_ref          : [C, C]    bp_ref : [1, C]
    # o_ref           : [TB, N, C]
    tb, n, c = x1_ref.shape
    hd = c // num_heads

    # Fuse the window-batch dim into M for the projection matmuls (MXU).
    x1 = x1_ref[...].reshape(tb * n, c).astype(jnp.float32)
    x2 = x2_ref[...].reshape(tb * n, c).astype(jnp.float32)

    q = jnp.dot(x1, wq_ref[...].astype(jnp.float32),
                preferred_element_type=jnp.float32) + bq_ref[0, :][None, :]
    q = q * scale                                             # matches torch: q = q1 * scale
    kv = jnp.dot(x2, wkv_ref[...].astype(jnp.float32),
                 preferred_element_type=jnp.float32) + bkv_ref[0, :][None, :]
    k = kv[:, :c]
    v = kv[:, c:]

    # Per-head attention, statically unrolled over heads (nH is small); the
    # window-batch stays as the einsum batch dim so each head is one batched
    # [TB, N, hd] x [TB, N, hd] -> [TB, N, N] matmul.
    head_outs = []
    for h in range(num_heads):
        lo, hi = h * hd, (h + 1) * hd
        q_h = q[:, lo:hi].reshape(tb, n, hd)
        k_h = k[:, lo:hi].reshape(tb, n, hd)
        v_h = v[:, lo:hi].reshape(tb, n, hd)

        s = jnp.einsum('bqd,bkd->bqk', q_h, k_h,
                       preferred_element_type=jnp.float32)     # [TB, N, N]
        s = s + bias_ref[h][None, :, :]                        # relative position bias

        # numerically-stable softmax over the key axis (stays in vregs)
        m = jnp.max(s, axis=-1, keepdims=True)
        p = jnp.exp(s - m)
        p = p / jnp.sum(p, axis=-1, keepdims=True)

        head_outs.append(jnp.einsum('bqk,bkd->bqd', p, v_h,
                                    preferred_element_type=jnp.float32))

    ctx = jnp.concatenate(head_outs, axis=-1).reshape(tb * n, c)   # [TB*N, C]

    # Output projection, again with the batch fused into M.
    y = jnp.dot(ctx, wp_ref[...].astype(jnp.float32),
                preferred_element_type=jnp.float32) + bp_ref[0, :][None, :]
    o_ref[...] = y.reshape(tb, n, c).astype(o_ref.dtype)


def window_attention_forward(x1, x2, w_qkv, b_qkv, w_proj, b_proj,
                             rel_pos_bias, scale, num_heads, *, tb=None):
    """WindowAttention forward (mask=None path).

    x1, x2       : [B_, N, C]   (B_ = num_windows * batch, N = Wh*Ww, C = dim)
    w_qkv        : [C, 3C]      (torch qkv.weight transposed)
    b_qkv        : [3C]
    w_proj       : [C, C]       (torch proj.weight transposed)
    b_proj       : [C]
    rel_pos_bias : [nH, N, N]   (table gathered by relative_position_index)
    returns      : [B_, N, C]
    """
    B_, N, C = x1.shape
    nH = num_heads
    if tb is None:
        tb = B_
    assert B_ % tb == 0, "window-batch must be divisible by the tile size"

    # Only q is needed from x1, only k/v from x2 -> split the fused qkv weight.
    w_q = w_qkv[:, :C]
    w_kv = w_qkv[:, C:]
    b_q = b_qkv[:C].reshape(1, C)
    b_kv = b_qkv[C:].reshape(1, 2 * C)
    b_p = b_proj.reshape(1, C)

    kernel = functools.partial(_window_attn_kernel, scale=float(scale),
                               num_heads=nH)

    out = pl.pallas_call(
        kernel,
        out_shape=jax.ShapeDtypeStruct((B_, N, C), x1.dtype),
        grid_spec=pltpu.PrefetchScalarGridSpec(
            num_scalar_prefetch=0,
            grid=(B_ // tb,),
            in_specs=[
                pl.BlockSpec((tb, N, C), lambda b: (b, 0, 0)),      # x1 tile
                pl.BlockSpec((tb, N, C), lambda b: (b, 0, 0)),      # x2 tile
                pl.BlockSpec((C, C), lambda b: (0, 0)),             # Wq
                pl.BlockSpec((1, C), lambda b: (0, 0)),             # bq
                pl.BlockSpec((C, 2 * C), lambda b: (0, 0)),         # Wkv
                pl.BlockSpec((1, 2 * C), lambda b: (0, 0)),         # bkv
                pl.BlockSpec((nH, N, N), lambda b: (0, 0, 0)),      # rel-pos bias
                pl.BlockSpec((C, C), lambda b: (0, 0)),             # Wproj
                pl.BlockSpec((1, C), lambda b: (0, 0)),             # bproj
            ],
            out_specs=pl.BlockSpec((tb, N, C), lambda b: (b, 0, 0)),
        ),
        compiler_params=pltpu.CompilerParams(
            dimension_semantics=("parallel",)),                     # megacore-shardable
    )(x1, x2, w_q, b_q, w_kv, b_kv, rel_pos_bias, w_proj, b_p)

    return out


def _relative_position_index(window_size):
    """Replicates the PyTorch buffer construction."""
    wh, ww = window_size
    coords = jnp.stack(jnp.meshgrid(jnp.arange(wh), jnp.arange(ww),
                                    indexing="ij"))                 # [2, Wh, Ww]
    coords_flat = coords.reshape(2, -1)                             # [2, N]
    rel = coords_flat[:, :, None] - coords_flat[:, None, :]         # [2, N, N]
    rel = rel.transpose(1, 2, 0)                                    # [N, N, 2]
    rel = rel.at[:, :, 0].add(wh - 1)
    rel = rel.at[:, :, 1].add(ww - 1)
    rel = rel.at[:, :, 0].multiply(2 * ww - 1)
    return rel.sum(-1)                                              # [N, N]


def _reference(x1, x2, w_qkv, b_qkv, w_proj, b_proj, rel_pos_bias, scale, nH):
    """Pure-JAX mirror of the PyTorch WindowAttention.forward (mask=None)."""
    B_, N, C = x1.shape
    hd = C // nH
    qkv1 = (x1 @ w_qkv + b_qkv).reshape(B_, N, 3, nH, hd).transpose(2, 0, 3, 1, 4)
    q1 = qkv1[0]
    qkv2 = (x2 @ w_qkv + b_qkv).reshape(B_, N, 3, nH, hd).transpose(2, 0, 3, 1, 4)
    k2, v2 = qkv2[1], qkv2[2]
    q = q1 * scale
    attn = q @ jnp.swapaxes(k2, -2, -1)                             # [B_, nH, N, N]
    attn = attn + rel_pos_bias[None]
    attn = jax.nn.softmax(attn, axis=-1)
    x = jnp.swapaxes(attn @ v2, 1, 2).reshape(B_, N, C)
    return x @ w_proj + b_proj


if __name__ == "__main__":
    # Small, module-consistent shapes: dim=32, 4 heads, 4x4 windows (N=16), 4 windows.
    dim, num_heads = 32, 4
    window_size = (4, 4)
    N = window_size[0] * window_size[1]
    B_ = 4
    head_dim = dim // num_heads
    scale = head_dim ** -0.5

    key = jax.random.PRNGKey(0)
    ks = jax.random.split(key, 7)
    x1 = jax.random.normal(ks[0], (B_, N, dim), dtype=jnp.float32)
    x2 = jax.random.normal(ks[1], (B_, N, dim), dtype=jnp.float32)
    # torch nn.Linear weights stored transposed for x @ W layout
    w_qkv = jax.random.normal(ks[2], (dim, 3 * dim), dtype=jnp.float32) * 0.05
    b_qkv = jax.random.normal(ks[3], (3 * dim,), dtype=jnp.float32) * 0.05
    w_proj = jax.random.normal(ks[4], (dim, dim), dtype=jnp.float32) * 0.05
    b_proj = jax.random.normal(ks[5], (dim,), dtype=jnp.float32) * 0.05
    table_len = (2 * window_size[0] - 1) * (2 * window_size[1] - 1)
    rpb_table = jax.random.normal(ks[6], (table_len, num_heads),
                                  dtype=jnp.float32) * 0.02

    # Parameter-only gather of the relative position bias (done once, outside the kernel).
    rpi = _relative_position_index(window_size)                     # [N, N]
    rel_pos_bias = rpb_table[rpi.reshape(-1)].reshape(N, N, num_heads)
    rel_pos_bias = rel_pos_bias.transpose(2, 0, 1)                  # [nH, N, N]

    out = window_attention_forward(x1, x2, w_qkv, b_qkv, w_proj, b_proj,
                                   rel_pos_bias, scale, num_heads, tb=2)
    out = jax.block_until_ready(out)

    ref = jax.block_until_ready(
        _reference(x1, x2, w_qkv, b_qkv, w_proj, b_proj, rel_pos_bias,
                   scale, num_heads))

    assert out.shape == (B_, N, dim)
    assert jnp.allclose(out, ref, atol=1e-4, rtol=1e-4), "mismatch vs reference"
    print("KERNEL_OK")
</pallas_src>

<mosaic_0001>
module attributes {stable_mosaic.version = 11 : i64} {
  func.func @_window_attn_kernel(%arg0: i32, %arg1: memref<2x16x32xf32, #tpu.memory_space<vmem>>, %arg2: memref<2x16x32xf32, #tpu.memory_space<vmem>>, %arg3: memref<32x32xf32, #tpu.memory_space<vmem>>, %arg4: memref<1x32xf32, #tpu.memory_space<vmem>>, %arg5: memref<32x64xf32, #tpu.memory_space<vmem>>, %arg6: memref<1x64xf32, #tpu.memory_space<vmem>>, %arg7: memref<4x16x16xf32, #tpu.memory_space<vmem>>, %arg8: memref<32x32xf32, #tpu.memory_space<vmem>>, %arg9: memref<1x32xf32, #tpu.memory_space<vmem>>, %arg10: memref<2x16x32xf32, #tpu.memory_space<vmem>>) attributes {dimension_semantics = [#tpu.dimension_semantics<parallel>], iteration_bounds = array<i64: 2>, scalar_prefetch = 0 : i64, scratch_operands = 0 : i64, tpu.core_type = #tpu.core_type<tc>, window_params = [{transform_indices = @transform_0, window_bounds = array<i64: 2, 16, 32>}, {transform_indices = @transform_1, window_bounds = array<i64: 2, 16, 32>}, {pipeline_mode = #tpu.pipeline_mode<synchronous>, transform_indices = @transform_2, window_bounds = array<i64: 32, 32>}, {pipeline_mode = #tpu.pipeline_mode<synchronous>, transform_indices = @transform_3, window_bounds = array<i64: 1, 32>}, {pipeline_mode = #tpu.pipeline_mode<synchronous>, transform_indices = @transform_4, window_bounds = array<i64: 32, 64>}, {pipeline_mode = #tpu.pipeline_mode<synchronous>, transform_indices = @transform_5, window_bounds = array<i64: 1, 64>}, {pipeline_mode = #tpu.pipeline_mode<synchronous>, transform_indices = @transform_6, window_bounds = array<i64: 4, 16, 16>}, {pipeline_mode = #tpu.pipeline_mode<synchronous>, transform_indices = @transform_7, window_bounds = array<i64: 32, 32>}, {pipeline_mode = #tpu.pipeline_mode<synchronous>, transform_indices = @transform_8, window_bounds = array<i64: 1, 32>}, {transform_indices = @transform_9, window_bounds = array<i64: 2, 16, 32>}]} {
    %c0 = arith.constant 0 : index
    %c0_0 = arith.constant 0 : index
    %c0_1 = arith.constant 0 : index
    %0 = vector.load %arg1[%c0, %c0_0, %c0_1] : memref<2x16x32xf32, #tpu.memory_space<vmem>>, vector<2x16x32xf32>
    %1 = vector.shape_cast %0 : vector<2x16x32xf32> to vector<32x32xf32>
    %c0_2 = arith.constant 0 : index
    %c0_3 = arith.constant 0 : index
    %c0_4 = arith.constant 0 : index
    %2 = vector.load %arg2[%c0_2, %c0_3, %c0_4] : memref<2x16x32xf32, #tpu.memory_space<vmem>>, vector<2x16x32xf32>
    %3 = vector.shape_cast %2 : vector<2x16x32xf32> to vector<32x32xf32>
    %c0_5 = arith.constant 0 : index
    %c0_6 = arith.constant 0 : index
    %4 = vector.load %arg3[%c0_5, %c0_6] : memref<32x32xf32, #tpu.memory_space<vmem>>, vector<32x32xf32>
    %cst = arith.constant dense<0.000000e+00> : vector<32x32xf32>
    %5 = tpu.matmul %1, %4, %cst {dimension_numbers = #tpu.dot_dimension_numbers<[1], [0], [0], [1], [0, 0, 1, 1], [], []>} : vector<32x32xf32>, vector<32x32xf32>, vector<32x32xf32> -> vector<32x32xf32>
    %c0_7 = arith.constant 0 : index
    %c0_8 = arith.constant 0 : index
    %6 = vector.load %arg4[%c0_7, %c0_8] : memref<1x32xf32, #tpu.memory_space<vmem>>, vector<1x32xf32>
    %7 = vector.shape_cast %6 : vector<1x32xf32> to vector<32xf32>
    %8 = vector.shape_cast %7 : vector<32xf32> to vector<1x32xf32>
    %9 = vector.broadcast %8 : vector<1x32xf32> to vector<32x32xf32>
    %10 = arith.addf %5, %9 : vector<32x32xf32>
    %cst_9 = arith.constant 0.353553385 : f32
    %11 = vector.broadcast %cst_9 : f32 to vector<32x32xf32>
    %12 = arith.mulf %10, %11 : vector<32x32xf32>
    %c0_10 = arith.constant 0 : index
    %c0_11 = arith.constant 0 : index
    %13 = vector.load %arg5[%c0_10, %c0_11] : memref<32x64xf32, #tpu.memory_space<vmem>>, vector<32x64xf32>
    %cst_12 = arith.constant dense<0.000000e+00> : vector<32x64xf32>
    %14 = tpu.matmul %3, %13, %cst_12 {dimension_numbers = #tpu.dot_dimension_numbers<[1], [0], [0], [1], [0, 0, 1, 1], [], []>} : vector<32x32xf32>, vector<32x64xf32>, vector<32x64xf32> -> vector<32x64xf32>
    %c0_13 = arith.constant 0 : index
    %c0_14 = arith.constant 0 : index
    %15 = vector.load %arg6[%c0_13, %c0_14] : memref<1x64xf32, #tpu.memory_space<vmem>>, vector<1x64xf32>
    %16 = vector.shape_cast %15 : vector<1x64xf32> to vector<64xf32>
    %17 = vector.shape_cast %16 : vector<64xf32> to vector<1x64xf32>
    %18 = vector.broadcast %17 : vector<1x64xf32> to vector<32x64xf32>
    %19 = arith.addf %14, %18 : vector<32x64xf32>
    %20 = vector.extract_strided_slice %19 {offsets = [0, 0], sizes = [32, 32], strides = [1, 1]} : vector<32x64xf32> to vector<32x32xf32>
    %21 = vector.extract_strided_slice %19 {offsets = [0, 32], sizes = [32, 32], strides = [1, 1]} : vector<32x64xf32> to vector<32x32xf32>
    %22 = vector.extract_strided_slice %12 {offsets = [0, 0], sizes = [32, 8], strides = [1, 1]} : vector<32x32xf32> to vector<32x8xf32>
    %23 = vector.shape_cast %22 : vector<32x8xf32> to vector<2x16x8xf32>
    %24 = vector.extract_strided_slice %20 {offsets = [0, 0], sizes = [32, 8], strides = [1, 1]} : vector<32x32xf32> to vector<32x8xf32>
    %25 = vector.shape_cast %24 : vector<32x8xf32> to vector<2x16x8xf32>
    %26 = vector.extract_strided_slice %21 {offsets = [0, 0], sizes = [32, 8], strides = [1, 1]} : vector<32x32xf32> to vector<32x8xf32>
    %27 = vector.shape_cast %26 : vector<32x8xf32> to vector<2x16x8xf32>
    "tpu.trace_start"() <{level = 10 : i32, message = "bqd,bkd->bqk"}> : () -> ()
    %cst_15 = arith.constant dense<0.000000e+00> : vector<2x16x16xf32>
    %28 = tpu.matmul %23, %25, %cst_15 {dimension_numbers = #tpu.dot_dimension_numbers<[2], [2], [1], [1], [0, 0, 0, 1, 1, 1], [0], [0]>} : vector<2x16x8xf32>, vector<2x16x8xf32>, vector<2x16x16xf32> -> vector<2x16x16xf32>
    "tpu.trace_stop"() : () -> ()
    %c0_16 = arith.constant 0 : index
    %c0_17 = arith.constant 0 : index
    %c0_18 = arith.constant 0 : index
    %29 = vector.load %arg7[%c0_16, %c0_17, %c0_18] : memref<4x16x16xf32, #tpu.memory_space<vmem>>, vector<1x16x16xf32>
    %30 = vector.shape_cast %29 : vector<1x16x16xf32> to vector<16x16xf32>
    %31 = vector.shape_cast %30 : vector<16x16xf32> to vector<1x16x16xf32>
    %32 = vector.broadcast %31 : vector<1x16x16xf32> to vector<2x16x16xf32>
    %33 = arith.addf %28, %32 : vector<2x16x16xf32>
    %cst_19 = arith.constant dense<0xFF800000> : vector<2x16xf32>
    %34 = vector.multi_reduction <maximumf>, %33, %cst_19 [2] : vector<2x16x16xf32> to vector<2x16xf32>
    %35 = vector.shape_cast %34 : vector<2x16xf32> to vector<2x16x1xf32>
    %36 = vector.broadcast %35 : vector<2x16x1xf32> to vector<2x16x16xf32>
    %37 = arith.subf %33, %36 : vector<2x16x16xf32>
    %38 = math.exp %37 : vector<2x16x16xf32>
    %cst_20 = arith.constant dense<0.000000e+00> : vector<2x16xf32>
    %39 = vector.multi_reduction <add>, %38, %cst_20 [2] : vector<2x16x16xf32> to vector<2x16xf32>
    %40 = vector.shape_cast %39 : vector<2x16xf32> to vector<2x16x1xf32>
    %41 = vector.broadcast %40 : vector<2x16x1xf32> to vector<2x16x16xf32>
    %42 = arith.divf %38, %41 : vector<2x16x16xf32>
    "tpu.trace_start"() <{level = 10 : i32, message = "bqk,bkd->bqd"}> : () -> ()
    %cst_21 = arith.constant dense<0.000000e+00> : vector<2x16x8xf32>
    %43 = tpu.matmul %42, %27, %cst_21 {dimension_numbers = #tpu.dot_dimension_numbers<[2], [1], [1], [2], [0, 0, 0, 1, 1, 2], [0], [0]>} : vector<2x16x16xf32>, vector<2x16x8xf32>, vector<2x16x8xf32> -> vector<2x16x8xf32>
    "tpu.trace_stop"() : () -> ()
    %44 = vector.extract_strided_slice %12 {offsets = [0, 8], sizes = [32, 8], strides = [1, 1]} : vector<32x32xf32> to vector<32x8xf32>
    %45 = vector.shape_cast %44 : vector<32x8xf32> to vector<2x16x8xf32>
    %46 = vector.extract_strided_slice %20 {offsets = [0, 8], sizes = [32, 8], strides = [1, 1]} : vector<32x32xf32> to vector<32x8xf32>
    %47 = vector.shape_cast %46 : vector<32x8xf32> to vector<2x16x8xf32>
    %48 = vector.extract_strided_slice %21 {offsets = [0, 8], sizes = [32, 8], strides = [1, 1]} : vector<32x32xf32> to vector<32x8xf32>
    %49 = vector.shape_cast %48 : vector<32x8xf32> to vector<2x16x8xf32>
    "tpu.trace_start"() <{level = 10 : i32, message = "bqd,bkd->bqk"}> : () -> ()
    %cst_22 = arith.constant dense<0.000000e+00> : vector<2x16x16xf32>
    %50 = tpu.matmul %45, %47, %cst_22 {dimension_numbers = #tpu.dot_dimension_numbers<[2], [2], [1], [1], [0, 0, 0, 1, 1, 1], [0], [0]>} : vector<2x16x8xf32>, vector<2x16x8xf32>, vector<2x16x16xf32> -> vector<2x16x16xf32>
    "tpu.trace_stop"() : () -> ()
    %c1 = arith.constant 1 : index
    %c0_23 = arith.constant 0 : index
    %c0_24 = arith.constant 0 : index
    %51 = vector.load %arg7[%c1, %c0_23, %c0_24] : memref<4x16x16xf32, #tpu.memory_space<vmem>>, vector<1x16x16xf32>
    %52 = vector.shape_cast %51 : vector<1x16x16xf32> to vector<16x16xf32>
    %53 = vector.shape_cast %52 : vector<16x16xf32> to vector<1x16x16xf32>
    %54 = vector.broadcast %53 : vector<1x16x16xf32> to vector<2x16x16xf32>
    %55 = arith.addf %50, %54 : vector<2x16x16xf32>
    %cst_25 = arith.constant dense<0xFF800000> : vector<2x16xf32>
    %56 = vector.multi_reduction <maximumf>, %55, %cst_25 [2] : vector<2x16x16xf32> to vector<2x16xf32>
    %57 = vector.shape_cast %56 : vector<2x16xf32> to vector<2x16x1xf32>
    %58 = vector.broadcast %57 : vector<2x16x1xf32> to vector<2x16x16xf32>
    %59 = arith.subf %55, %58 : vector<2x16x16xf32>
    %60 = math.exp %59 : vector<2x16x16xf32>
    %cst_26 = arith.constant dense<0.000000e+00> : vector<2x16xf32>
    %61 = vector.multi_reduction <add>, %60, %cst_26 [2] : vector<2x16x16xf32> to vector<2x16xf32>
    %62 = vector.shape_cast %61 : vector<2x16xf32> to vector<2x16x1xf32>
    %63 = vector.broadcast %62 : vector<2x16x1xf32> to vector<2x16x16xf32>
    %64 = arith.divf %60, %63 : vector<2x16x16xf32>
    "tpu.trace_start"() <{level = 10 : i32, message = "bqk,bkd->bqd"}> : () -> ()
    %cst_27 = arith.constant dense<0.000000e+00> : vector<2x16x8xf32>
    %65 = tpu.matmul %64, %49, %cst_27 {dimension_numbers = #tpu.dot_dimension_numbers<[2], [1], [1], [2], [0, 0, 0, 1, 1, 2], [0], [0]>} : vector<2x16x16xf32>, vector<2x16x8xf32>, vector<2x16x8xf32> -> vector<2x16x8xf32>
    "tpu.trace_stop"() : () -> ()
    %66 = vector.extract_strided_slice %12 {offsets = [0, 16], sizes = [32, 8], strides = [1, 1]} : vector<32x32xf32> to vector<32x8xf32>
    %67 = vector.shape_cast %66 : vector<32x8xf32> to vector<2x16x8xf32>
    %68 = vector.extract_strided_slice %20 {offsets = [0, 16], sizes = [32, 8], strides = [1, 1]} : vector<32x32xf32> to vector<32x8xf32>
    %69 = vector.shape_cast %68 : vector<32x8xf32> to vector<2x16x8xf32>
    %70 = vector.extract_strided_slice %21 {offsets = [0, 16], sizes = [32, 8], strides = [1, 1]} : vector<32x32xf32> to vector<32x8xf32>
    %71 = vector.shape_cast %70 : vector<32x8xf32> to vector<2x16x8xf32>
    "tpu.trace_start"() <{level = 10 : i32, message = "bqd,bkd->bqk"}> : () -> ()
    %cst_28 = arith.constant dense<0.000000e+00> : vector<2x16x16xf32>
    %72 = tpu.matmul %67, %69, %cst_28 {dimension_numbers = #tpu.dot_dimension_numbers<[2], [2], [1], [1], [0, 0, 0, 1, 1, 1], [0], [0]>} : vector<2x16x8xf32>, vector<2x16x8xf32>, vector<2x16x16xf32> -> vector<2x16x16xf32>
    "tpu.trace_stop"() : () -> ()
    %c2 = arith.constant 2 : index
    %c0_29 = arith.constant 0 : index
    %c0_30 = arith.constant 0 : index
    %73 = vector.load %arg7[%c2, %c0_29, %c0_30] : memref<4x16x16xf32, #tpu.memory_space<vmem>>, vector<1x16x16xf32>
    %74 = vector.shape_cast %73 : vector<1x16x16xf32> to vector<16x16xf32>
    %75 = vector.shape_cast %74 : vector<16x16xf32> to vector<1x16x16xf32>
    %76 = vector.broadcast %75 : vector<1x16x16xf32> to vector<2x16x16xf32>
    %77 = arith.addf %72, %76 : vector<2x16x16xf32>
    %cst_31 = arith.constant dense<0xFF800000> : vector<2x16xf32>
    %78 = vector.multi_reduction <maximumf>, %77, %cst_31 [2] : vector<2x16x16xf32> to vector<2x16xf32>
    %79 = vector.shape_cast %78 : vector<2x16xf32> to vector<2x16x1xf32>
    %80 = vector.broadcast %79 : vector<2x16x1xf32> to vector<2x16x16xf32>
    %81 = arith.subf %77, %80 : vector<2x16x16xf32>
    %82 = math.exp %81 : vector<2x16x16xf32>
    %cst_32 = arith.constant dense<0.000000e+00> : vector<2x16xf32>
    %83 = vector.multi_reduction <add>, %82, %cst_32 [2] : vector<2x16x16xf32> to vector<2x16xf32>
    %84 = vector.shape_cast %83 : vector<2x16xf32> to vector<2x16x1xf32>
    %85 = vector.broadcast %84 : vector<2x16x1xf32> to vector<2x16x16xf32>
    %86 = arith.divf %82, %85 : vector<2x16x16xf32>
    "tpu.trace_start"() <{level = 10 : i32, message = "bqk,bkd->bqd"}> : () -> ()
    %cst_33 = arith.constant dense<0.000000e+00> : vector<2x16x8xf32>
    %87 = tpu.matmul %86, %71, %cst_33 {dimension_numbers = #tpu.dot_dimension_numbers<[2], [1], [1], [2], [0, 0, 0, 1, 1, 2], [0], [0]>} : vector<2x16x16xf32>, vector<2x16x8xf32>, vector<2x16x8xf32> -> vector<2x16x8xf32>
    "tpu.trace_stop"() : () -> ()
    %88 = vector.extract_strided_slice %12 {offsets = [0, 24], sizes = [32, 8], strides = [1, 1]} : vector<32x32xf32> to vector<32x8xf32>
    %89 = vector.shape_cast %88 : vector<32x8xf32> to vector<2x16x8xf32>
    %90 = vector.extract_strided_slice %20 {offsets = [0, 24], sizes = [32, 8], strides = [1, 1]} : vector<32x32xf32> to vector<32x8xf32>
    %91 = vector.shape_cast %90 : vector<32x8xf32> to vector<2x16x8xf32>
    %92 = vector.extract_strided_slice %21 {offsets = [0, 24], sizes = [32, 8], strides = [1, 1]} : vector<32x32xf32> to vector<32x8xf32>
    %93 = vector.shape_cast %92 : vector<32x8xf32> to vector<2x16x8xf32>
    "tpu.trace_start"() <{level = 10 : i32, message = "bqd,bkd->bqk"}> : () -> ()
    %cst_34 = arith.constant dense<0.000000e+00> : vector<2x16x16xf32>
    %94 = tpu.matmul %89, %91, %cst_34 {dimension_numbers = #tpu.dot_dimension_numbers<[2], [2], [1], [1], [0, 0, 0, 1, 1, 1], [0], [0]>} : vector<2x16x8xf32>, vector<2x16x8xf32>, vector<2x16x16xf32> -> vector<2x16x16xf32>
    "tpu.trace_stop"() : () -> ()
    %c3 = arith.constant 3 : index
    %c0_35 = arith.constant 0 : index
    %c0_36 = arith.constant 0 : index
    %95 = vector.load %arg7[%c3, %c0_35, %c0_36] : memref<4x16x16xf32, #tpu.memory_space<vmem>>, vector<1x16x16xf32>
    %96 = vector.shape_cast %95 : vector<1x16x16xf32> to vector<16x16xf32>
    %97 = vector.shape_cast %96 : vector<16x16xf32> to vector<1x16x16xf32>
    %98 = vector.broadcast %97 : vector<1x16x16xf32> to vector<2x16x16xf32>
    %99 = arith.addf %94, %98 : vector<2x16x16xf32>
    %cst_37 = arith.constant dense<0xFF800000> : vector<2x16xf32>
    %100 = vector.multi_reduction <maximumf>, %99, %cst_37 [2] : vector<2x16x16xf32> to vector<2x16xf32>
    %101 = vector.shape_cast %100 : vector<2x16xf32> to vector<2x16x1xf32>
    %102 = vector.broadcast %101 : vector<2x16x1xf32> to vector<2x16x16xf32>
    %103 = arith.subf %99, %102 : vector<2x16x16xf32>
    %104 = math.exp %103 : vector<2x16x16xf32>
    %cst_38 = arith.constant dense<0.000000e+00> : vector<2x16xf32>
    %105 = vector.multi_reduction <add>, %104, %cst_38 [2] : vector<2x16x16xf32> to vector<2x16xf32>
    %106 = vector.shape_cast %105 : vector<2x16xf32> to vector<2x16x1xf32>
    %107 = vector.broadcast %106 : vector<2x16x1xf32> to vector<2x16x16xf32>
    %108 = arith.divf %104, %107 : vector<2x16x16xf32>
    "tpu.trace_start"() <{level = 10 : i32, message = "bqk,bkd->bqd"}> : () -> ()
    %cst_39 = arith.constant dense<0.000000e+00> : vector<2x16x8xf32>
    %109 = tpu.matmul %108, %93, %cst_39 {dimension_numbers = #tpu.dot_dimension_numbers<[2], [1], [1], [2], [0, 0, 0, 1, 1, 2], [0], [0]>} : vector<2x16x16xf32>, vector<2x16x8xf32>, vector<2x16x8xf32> -> vector<2x16x8xf32>
    "tpu.trace_stop"() : () -> ()
    %110 = tpu.concatenate %43, %65, %87, %109 in 2 : vector<2x16x8xf32>, vector<2x16x8xf32>, vector<2x16x8xf32>, vector<2x16x8xf32> -> vector<2x16x32xf32>
    %111 = vector.shape_cast %110 : vector<2x16x32xf32> to vector<32x32xf32>
    %c0_40 = arith.constant 0 : index
    %c0_41 = arith.constant 0 : index
    %112 = vector.load %arg8[%c0_40, %c0_41] : memref<32x32xf32, #tpu.memory_space<vmem>>, vector<32x32xf32>
    %cst_42 = arith.constant dense<0.000000e+00> : vector<32x32xf32>
    %113 = tpu.matmul %111, %112, %cst_42 {dimension_numbers = #tpu.dot_dimension_numbers<[1], [0], [0], [1], [0, 0, 1, 1], [], []>} : vector<32x32xf32>, vector<32x32xf32>, vector<32x32xf32> -> vector<32x32xf32>
    %c0_43 = arith.constant 0 : index
    %c0_44 = arith.constant 0 : index
    %114 = vector.load %arg9[%c0_43, %c0_44] : memref<1x32xf32, #tpu.memory_space<vmem>>, vector<1x32xf32>
    %115 = vector.shape_cast %114 : vector<1x32xf32> to vector<32xf32>
    %116 = vector.shape_cast %115 : vector<32xf32> to vector<1x32xf32>
    %117 = vector.broadcast %116 : vector<1x32xf32> to vector<32x32xf32>
    %118 = arith.addf %113, %117 : vector<32x32xf32>
    %119 = vector.shape_cast %118 : vector<32x32xf32> to vector<2x16x32xf32>
    %c0_45 = arith.constant 0 : index
    %c0_46 = arith.constant 0 : index
    %c0_47 = arith.constant 0 : index
    %120 = vector.load %arg10[%c0_45, %c0_46, %c0_47] : memref<2x16x32xf32, #tpu.memory_space<vmem>>, vector<2x16x32xf32>
    tpu.vector_store %arg10[%c0_45, %c0_46, %c0_47], %119 {strides = array<i32>} : memref<2x16x32xf32, #tpu.memory_space<vmem>>, vector<2x16x32xf32>,
    return
  }
  func.func @transform_0(%arg0: i32) -> (i32, i32, i32) {
    %c0_i32 = arith.constant 0 : i32
    %c0_i32_0 = arith.constant 0 : i32
    %c0_i32_1 = arith.constant 0 : i32
    return %arg0, %c0_i32, %c0_i32_0 : i32, i32, i32
  }
  func.func @transform_1(%arg0: i32) -> (i32, i32, i32) {
    %c0_i32 = arith.constant 0 : i32
    %c0_i32_0 = arith.constant 0 : i32
    %c0_i32_1 = arith.constant 0 : i32
    return %arg0, %c0_i32, %c0_i32_0 : i32, i32, i32
  }
  func.func @transform_2(%arg0: i32) -> (i32, i32) {
    %c0_i32 = arith.constant 0 : i32
    %c0_i32_0 = arith.constant 0 : i32
    %c0_i32_1 = arith.constant 0 : i32
    return %c0_i32, %c0_i32_0 : i32, i32
  }
  func.func @transform_3(%arg0: i32) -> (i32, i32) {
    %c0_i32 = arith.constant 0 : i32
    %c0_i32_0 = arith.constant 0 : i32
    %c0_i32_1 = arith.constant 0 : i32
    return %c0_i32, %c0_i32_0 : i32, i32
  }
  func.func @transform_4(%arg0: i32) -> (i32, i32) {
    %c0_i32 = arith.constant 0 : i32
    %c0_i32_0 = arith.constant 0 : i32
    %c0_i32_1 = arith.constant 0 : i32
    return %c0_i32, %c0_i32_0 : i32, i32
  }
  func.func @transform_5(%arg0: i32) -> (i32, i32) {
    %c0_i32 = arith.constant 0 : i32
    %c0_i32_0 = arith.constant 0 : i32
    %c0_i32_1 = arith.constant 0 : i32
    return %c0_i32, %c0_i32_0 : i32, i32
  }
  func.func @transform_6(%arg0: i32) -> (i32, i32, i32) {
    %c0_i32 = arith.constant 0 : i32
    %c0_i32_0 = arith.constant 0 : i32
    %c0_i32_1 = arith.constant 0 : i32
    %c0_i32_2 = arith.constant 0 : i32
    return %c0_i32, %c0_i32_0, %c0_i32_1 : i32, i32, i32
  }
  func.func @transform_7(%arg0: i32) -> (i32, i32) {
    %c0_i32 = arith.constant 0 : i32
    %c0_i32_0 = arith.constant 0 : i32
    %c0_i32_1 = arith.constant 0 : i32
    return %c0_i32, %c0_i32_0 : i32, i32
  }
  func.func @transform_8(%arg0: i32) -> (i32, i32) {
    %c0_i32 = arith.constant 0 : i32
    %c0_i32_0 = arith.constant 0 : i32
    %c0_i32_1 = arith.constant 0 : i32
    return %c0_i32, %c0_i32_0 : i32, i32
  }
  func.func @transform_9(%arg0: i32) -> (i32, i32, i32) {
    %c0_i32 = arith.constant 0 : i32
    %c0_i32_0 = arith.constant 0 : i32
    %c0_i32_1 = arith.constant 0 : i32
    return %arg0, %c0_i32, %c0_i32_0 : i32, i32, i32
  }
}

</mosaic_0001>

<bundles_post_ra>
// kernel: tpu_custom_call.1
= control target key start
LH: loop header
LB: loop body
LE: loop exit
PB: predicated region body
PF: predicated region fallthrough
CT: control target
= control target key end

     0   :  { %s4205_s0 = inlined_call_operand.hbm [shape: f32[4,16,32], index: 0, kind: input, shape index: {}]   ;;  %s4206_s1 = inlined_call_operand.hbm [shape: f32[4,16,32], index: 1, kind: input, shape index: {}]   ;;  %s4207_s2 = inlined_call_operand.hbm [shape: f32[32,32], index: 2, kind: input, shape index: {}]   ;;  %s4208_s3 = inlined_call_operand.vmem [shape: f32[1,32], index: 3, kind: input, shape index: {}]   ;;  %s4209_s4 = inlined_call_operand.hbm [shape: f32[32,64], index: 4, kind: input, shape index: {}]   ;;  %s4210_s5 = inlined_call_operand.vmem [shape: f32[1,64], index: 5, kind: input, shape index: {}]   ;;  %s4211_s6 = inlined_call_operand.hbm [shape: f32[4,16,16], index: 6, kind: input, shape index: {}]   ;;  %s4212_s7 = inlined_call_operand.hbm [shape: f32[32,32], index: 7, kind: input, shape index: {}]   ;;  %s4213_s8 = inlined_call_operand.vmem [shape: f32[1,32], index: 8, kind: input, shape index: {}]   ;;  %s4214_s9 = inlined_call_operand.hbm [shape: f32[4,16,32], index: 9, kind: output, shape index: {}]  }
   0x1   :  { %4225 = sst [smem:[#allocation22_spill]] %s4205_s0 }
   0x2   :  { %4226 = sst [smem:[#allocation23_spill]] %s4207_s2 }
   0x3   :  { %4227 = sst [smem:[#allocation24_spill]] %s4209_s4 }
   0x4   :  { %4228 = sst [smem:[#allocation25_spill]] %s4214_s9 }
   0x5   :  { %14 = vsyncpa [#allocation3], 0 }
   0x6   :  { %16 = vsyncpa [#allocation3 + $0x1], 0 }
   0x7   :  { %17 = vsyncpa [#allocation6], 0 }
   0x8   :  { %19 = vsyncpa [#allocation6 + $0x1], 0 }
   0x9   :  { %20 = vsyncpa [#allocation9], 0 }
   0xa   :  { %21 = vsyncpa [#allocation12], 0 }
   0xb   :  { %22 = vsyncpa [#allocation4], 0 }
   0xc   :  { %24 = vsyncpa [#allocation4 + $0x1], 0  ;;  %s3619_s30 = smov 0   ;;  %s3621_s10 = smov 0  }
   0xd   :  { %s3623_s11 = smov 0   ;;  %s3625_s12 = smov 0  }
   0xe LB: > { %4229 = sst [smem:[#allocation20_spill]] %s3535_s30  ;;  %s3640_s13 = sadd.s32 4294967295, %s3547_s12   ;;  %s3547_s12 = sphi %s3625_s12, %s4262_s12   ;;  %s3543_s11 = sphi %s3623_s11, %s4261_s11   ;;  %s3539_s10 = sphi %s3621_s10, %s4260_s10   ;;  %s3535_s30 = sphi %s3619_s30, %s4259_s30  }
   0xf   : > { %s2610_s14 = sadd.s32 4294967294, %s3547_s12   ;;  %p50_p0 = scmp.ne.s32.totalorder %s3539_s10, %s3535_s30 }
  0x10   : > { %p4215_p1 = scmp.eq.s32.totalorder %s3640_s13, 0  ;;  %p253_p3 = scmp.eq.s32.totalorder %s2610_s14, 1 }
  0x11   : > { %p2611_p5 = scmp.ge.s32.totalorder %s3547_s12, 1  ;;  %p260_p7 = scmp.lt.s32.totalorder %s3547_s12, 3 }
  0x12   : > { %p3649_p4 = por %p4215_p1, %p50_p0  ;;  %p3654_p6 = por %p253_p3, %p50_p0 }
  0x13   : > { %p3659_p8 = pnand %p2611_p5, %p260_p7  ;;  %s3549_s18 = smov [#allocation7]  }
  0x14   : > { %s4230_s15 = scalar_select %p3649_p4, 1, 0 }
  0x15   : > { %s4231_s16 = scalar_select %p3654_p6, 1, 0 }
  0x16   : > { %s4233_s17 = scalar_select %p3659_p8, 1, 0 }
  0x17   : > { %4232 = sst [smem:[#allocation21_spill]] %s4231_s16  ;;  %s272_s19 = sshll.u32 %s3549_s18, 4  ;;  %s3663_s19 = int_to_ptr.vmem [resolvable:$true] %s272_s19 }
  0x18   : > { %p3076_p9 = pneg %p3659_p8  ;;  %s3550_s21 = smov [#allocation8]  }
  0x19   : > { %s288_s22 = sshll.u32 %s3550_s21, 4  ;;  %s3551_s23 = smov [#allocation10]   ;;  %s3674_s22 = int_to_ptr.vmem [resolvable:$true] %s288_s22 }
  0x1a   : > { %p3670_p11 = pnand %p3076_p9, %p4215_p1  ;;  %s3676_s24 = sshll.u32 %s3551_s23, 4  ;;  %s305_s24 = int_to_ptr.vmem [resolvable:$true] %s3676_s24 }
  0x1b   : > { %s4235_s2 = sld [smem:[#allocation23_spill]] }
  0x1c   : > { %p3686_p13 = pneg %p3670_p11 }
  0x21   : > { %s3293_s27 = scalar_lea.hbm %s4235_s2, 512 }
  0x22   : > { %p3294_p12 = scmp.ne.s32.totalorder %s4235_s2, %s3293_s27  ;;  %p3300_p5 = scmp.lt.u32.totalorder %s3293_s27, %s4235_s2 }
  0x24   : > { %p3296_p0 = pnand %p3686_p13, %p3294_p12 }
  0x26   : > { %p3297_p3 = pneg %p3296_p0 }
  0x28   : > { %p3302_p7 = pnand %p3300_p5, %p3297_p3 }
  0x2a   : > { %3305 = shalt.err (!%p3302_p7)
}
  0x2b   : > { %s3306_s23 = scalar_lea.vmem %s3663_s19, 512  ;;  %p3314_p2 = scmp.lt.s32.totalorder %s3663_s19, %s3663_s19 }
  0x2c   : > { %p3307_p9 = scmp.ne.s32.totalorder %s3663_s19, %s3306_s23  ;;  %p3315_p6 = scmp.lt.s32.totalorder %s3306_s23, %s3306_s23 }
  0x2e   : > { %p3309_p10 = pnand %p3307_p9, %p3686_p13  ;;  %p3316_p12 = por %p3315_p6, %p3314_p2 }
  0x30   : > { %p3310_p1 = pneg %p3309_p10 }
  0x32   : > { %p3317_p0 = pnand %p3316_p12, %p3310_p1 }
  0x34   : > { %3320 = shalt.err (!%p3317_p0)
}
  0x35   : > { %s4221_s25 = smov 128   ;;  %s4223_s26 = smov 8  }
  0x36   : > { %3079 = dma.hbm_to_vmem [thread:$0]  (!%p3670_p11), %s4235_s2, 512, %s3663_s19, [#allocation6], %s4221_s25, %s4221_s25, %s4223_s26  }
  0x37   : > { %s4237_s4 = sld [smem:[#allocation24_spill]] }
  0x3d   : > { %s3321_s21 = scalar_lea.hbm %s4237_s4, 512 }
  0x3e   : > { %p3322_p1 = scmp.ne.s32.totalorder %s4237_s4, %s3321_s21  ;;  %p3328_p10 = scmp.lt.u32.totalorder %s3321_s21, %s4237_s4 }
  0x40   : > { %p3324_p2 = pnand %p3322_p1, %p3686_p13 }
  0x42   : > { %p3325_p6 = pneg %p3324_p2 }
  0x44   : > { %p3330_p3 = pnand %p3328_p10, %p3325_p6 }
  0x46   : > { %3333 = shalt.err (!%p3330_p3)
}
  0x47   : > { %s3334_s19 = scalar_lea.vmem %s3674_s22, 512  ;;  %p3342_p12 = scmp.lt.s32.totalorder %s3674_s22, %s3674_s22 }
  0x48   : > { %p3335_p5 = scmp.ne.s32.totalorder %s3674_s22, %s3334_s19  ;;  %p3343_p0 = scmp.lt.s32.totalorder %s3334_s19, %s3334_s19 }
  0x4a   : > { %p3337_p7 = pnand %p3335_p5, %p3686_p13  ;;  %p3344_p1 = por %p3343_p0, %p3342_p12 }
  0x4c   : > { %p3338_p9 = pneg %p3337_p7 }
  0x4e   : > { %p3345_p2 = pnand %p3344_p1, %p3338_p9 }
  0x50   : > { %3348 = shalt.err (!%p3345_p2)
}
  0x51   : > { %3082 = dma.hbm_to_vmem [thread:$0]  (!%p3670_p11), %s4237_s4, 512, %s3674_s22, [#allocation9], %s4221_s25, %s4221_s25, %s4223_s26  }
  0x52   : > { %s3349_s28 = scalar_lea.hbm %s4211_s6, 1024 }
  0x53   : > { %p3350_p6 = scmp.ne.s32.totalorder %s4211_s6, %s3349_s28  ;;  %p3356_p5 = scmp.lt.u32.totalorder %s3349_s28, %s4211_s6 }
  0x55   : > { %p3352_p10 = pnand %p3350_p6, %p3686_p13 }
  0x57   : > { %p3353_p3 = pneg %p3352_p10 }
  0x59   : > { %p3358_p7 = pnand %p3356_p5, %p3353_p3 }
  0x5b   : > { %3361 = shalt.err (!%p3358_p7)
}
  0x5c   : > { %s3362_s19 = scalar_lea.vmem %s305_s24, 1024  ;;  %p3370_p1 = scmp.lt.s32.totalorder %s305_s24, %s305_s24 }
  0x5d   : > { %p3363_p9 = scmp.ne.s32.totalorder %s305_s24, %s3362_s19  ;;  %p3371_p2 = scmp.lt.s32.totalorder %s3362_s19, %s3362_s19 }
  0x5f   : > { %p3365_p12 = pnand %p3363_p9, %p3686_p13  ;;  %p3372_p4 = por %p3371_p2, %p3370_p1 }
  0x61   : > { %p3366_p0 = pneg %p3365_p12 }
  0x63   : > { %p3373_p8 = pnand %p3372_p4, %p3366_p0 }
  0x65   : > { %3376 = shalt.err (!%p3373_p8)
}
  0x66   : > { %3085 = dma.hbm_to_vmem [thread:$0]  (!%p3670_p11), %s4211_s6, 1024, %s305_s24, [#allocation9], %s4221_s25, %s4221_s25, %s4223_s26  }
  0x67   : > { %s3554_s30 = smov [#allocation11]   ;;  %s3377_s29 = scalar_lea.hbm %s4212_s7, 512 }
  0x68   : > { %s317_s16 = sshll.u32 %s3554_s30, 4  ;;  %p3378_p4 = scmp.ne.s32.totalorder %s4212_s7, %s3377_s29  ;;  %s318_s16 = int_to_ptr.vmem [resolvable:$true] %s317_s16 }
  0x69   : > { %p3384_p10 = scmp.lt.u32.totalorder %s3377_s29, %s4212_s7 }
  0x6a   : > { %p3380_p8 = pnand %p3378_p4, %p3686_p13 }
  0x6c   : > { %p3381_p6 = pneg %p3380_p8 }
  0x6e   : > { %p3386_p3 = pnand %p3384_p10, %p3381_p6 }
  0x70   : > { %3389 = shalt.err (!%p3386_p3)
}
  0x71   : > { %s3390_s24 = scalar_lea.vmem %s318_s16, 512  ;;  %p3398_p12 = scmp.lt.s32.totalorder %s318_s16, %s318_s16 }
  0x72   : > { %p3391_p5 = scmp.ne.s32.totalorder %s318_s16, %s3390_s24  ;;  %p3399_p0 = scmp.lt.s32.totalorder %s3390_s24, %s3390_s24 }
  0x74   : > { %p3393_p7 = pnand %p3391_p5, %p3686_p13  ;;  %p3400_p1 = por %p3399_p0, %p3398_p12 }
  0x76   : > { %p3394_p9 = pneg %p3393_p7 }
  0x78   : > { %p3401_p2 = pnand %p3400_p1, %p3394_p9 }
  0x7a   : > { %3404 = shalt.err (!%p3401_p2)
}
  0x7b   : > { %3088 = dma.hbm_to_vmem [thread:$0]  (!%p3670_p11), %s4212_s7, 512, %s318_s16, [#allocation12], %s4221_s25, %s4221_s25, %s4223_s26  }
  0x7c   : > { %s3780_s14 = sadd.s32 1, %s3547_s12   ;;  %s37_s20 = sadd.s32 1, %s3543_s11 }
  0x7d   : > { %s34_s30 = ssub.s32 %s3547_s12, %s3780_s14  ;;  %p44_p13 = scmp.ne.s32.totalorder %s3543_s11, %s3539_s10 }
  0x7e   : > { %p35_p4 = scmp.eq.s32.totalorder %s34_s30, 0  ;;  %p45_p8 = scmp.eq.s32.totalorder %s3547_s12, 0 }
  0x7f   : > { %p4238_p6 = scmp.eq.s32.totalorder %s3640_s13, 1  ;;  %p3104_p3 = scmp.lt.s32.totalorder %s3547_s12, 2 }
  0x80   : > { %s3796_s28 = scalar_select %p35_p4, %s3543_s11, %s37_s20  }
  0x81   : > { %p3790_p10 = por %p4238_p6, %p44_p13  ;;  %p46_p5 = por %p45_p8, %p44_p13 }
  0x82   : > { %s334_s29 = sand.u32 1, %s3543_s11   ;;  %s2703_s16 = sshll.u32 %s3547_s12, 9 }
  0x83   : > { %s2617_s18 = sshll.u32 %s334_s29, 5  ;;  %s4240_s0 = sld [smem:[#allocation22_spill]] }
  0x84   : > { %s338_s24 = scalar_lea.vmem [#allocation2], %s2617_s18  ;;  %p3807_p11 = pnand %p3104_p3, %p46_p5 }
  0x85   : > { %s346_s22 = sshll.u32 %s338_s24, 4  ;;  %s3814_s21 = scalar_lea.hbm %s4206_s1, %s2703_s16  ;;  %s3805_s22 = int_to_ptr.vmem [resolvable:$true] %s346_s22 }
  0x86   : > { %s360_s23 = scalar_lea.vmem [#allocation5], %s2617_s18  ;;  %s3818_s26 = scalar_lea.sflag [#allocation3], %s334_s29 }
  0x87   : > { %s3816_s25 = sshll.u32 %s360_s23, 4  ;;  %p3407_p9 = pneg %p3807_p11  ;;  %s3850_s25 = int_to_ptr.vmem [resolvable:$true] %s3816_s25 }
  0x89   : > { %s3803_s19 = scalar_lea.hbm %s4240_s0, %s2703_s16  ;;  %s3410_s20 = scalar_lea.hbm %s4240_s0, 1024 }
  0x8a   : > { %s3405_s24 = scalar_lea.hbm %s3803_s19, 512  ;;  %p3411_p1 = scmp.lt.u32.totalorder %s3803_s19, %s4240_s0 }
  0x8b   : > { %p3406_p7 = scmp.ne.s32.totalorder %s3803_s19, %s3405_s24  ;;  %p3412_p2 = scmp.lt.u32.totalorder %s3410_s20, %s3405_s24 }
  0x8c   : > { %p3414_p4 = scmp.lt.u32.totalorder %s3405_s24, %s3803_s19 }
  0x8d   : > { %p3408_p12 = pnand %p3407_p9, %p3406_p7  ;;  %p3413_p13 = por %p3412_p2, %p3411_p1 }
  0x8f   : > { %p3409_p0 = pneg %p3408_p12  ;;  %p3415_p8 = por %p3414_p4, %p3413_p13 }
  0x91   : > { %p3416_p6 = pnand %p3415_p8, %p3409_p0 }
  0x93   : > { %3419 = shalt.err (!%p3416_p6)
}
  0x94   : > { %s3420_s29 = scalar_lea.vmem %s3805_s22, 512  ;;  %s3555_s2 = smov [#allocation2]  }
  0x95   : > { %p3421_p3 = scmp.ne.s32.totalorder %s3805_s22, %s3420_s29  ;;  %s3425_s4 = sshll.u32 %s3555_s2, 4  ;;  %s3426_s4 = int_to_ptr.vmem [resolvable:$false] %s3425_s4 }
  0x96   : > { %s3427_s18 = scalar_lea.vmem %s3426_s4, 1024  ;;  %p3428_p12 = scmp.lt.s32.totalorder %s3805_s22, %s3426_s4 }
  0x97   : > { %p3423_p5 = pnand %p3421_p3, %p3407_p9  ;;  %p3429_p1 = scmp.lt.s32.totalorder %s3427_s18, %s3420_s29 }
  0x99   : > { %p3424_p7 = pneg %p3423_p5  ;;  %p3430_p2 = por %p3429_p1, %p3428_p12 }
  0x9b   : > { %p3431_p13 = pnand %p3430_p2, %p3424_p7 }
  0x9d   : > { %3434 = shalt.err (!%p3431_p13)
}
  0x9e   : > { %s4242_s23 = smov 8   ;;  %s4243_s24 = smov 128  }
  0x9f   : > { %3092 = dma.hbm_to_vmem [thread:$0]  (!%p3807_p11), %s3803_s19, 512, %s3805_s22, %s3818_s26, %s4243_s24, %s4243_s24, %s4242_s23  }
  0xa0   : > { %s356_s20 = sand.u32 1, %s3547_s12   ;;  %s3435_s16 = scalar_lea.hbm %s3814_s21, 512 }
  0xa1   : > { %s3853_s30 = scalar_lea.sflag [#allocation6], %s356_s20  ;;  %p3436_p0 = scmp.ne.s32.totalorder %s3814_s21, %s3435_s16 }
  0xa2   : > { %s3440_s4 = scalar_lea.hbm %s4206_s1, 1024  ;;  %p3441_p6 = scmp.lt.u32.totalorder %s3814_s21, %s4206_s1 }
  0xa3   : > { %p3438_p4 = pnand %p3436_p0, %p3407_p9  ;;  %p3442_p3 = scmp.lt.u32.totalorder %s3440_s4, %s3435_s16 }
  0xa4   : > { %p3444_p7 = scmp.lt.u32.totalorder %s3435_s16, %s3814_s21 }
  0xa5   : > { %p3439_p8 = pneg %p3438_p4  ;;  %p3443_p5 = por %p3442_p3, %p3441_p6 }
  0xa7   : > { %p3445_p12 = por %p3444_p7, %p3443_p5 }
  0xa9   : > { %p3446_p1 = pnand %p3445_p12, %p3439_p8 }
  0xab   : > { %3449 = shalt.err (!%p3446_p1)
}
  0xac   : > { %s3450_s26 = scalar_lea.vmem %s3850_s25, 512  ;;  %s3556_s19 = smov [#allocation5]  }
  0xad   : > { %p3451_p2 = scmp.ne.s32.totalorder %s3850_s25, %s3450_s26  ;;  %s3455_s22 = sshll.u32 %s3556_s19, 4  ;;  %s3456_s22 = int_to_ptr.vmem [resolvable:$false] %s3455_s22 }
  0xae   : > { %s3457_s0 = scalar_lea.vmem %s3456_s22, 1024  ;;  %p3458_p4 = scmp.lt.s32.totalorder %s3850_s25, %s3456_s22 }
  0xaf   : > { %p3453_p13 = pnand %p3451_p2, %p3407_p9  ;;  %p3459_p6 = scmp.lt.s32.totalorder %s3457_s0, %s3450_s26 }
  0xb1   : > { %p3454_p0 = pneg %p3453_p13  ;;  %p3460_p3 = por %p3459_p6, %p3458_p4 }
  0xb3   : > { %p3461_p5 = pnand %p3460_p3, %p3454_p0 }
  0xb5   : > { %3464 = shalt.err (!%p3461_p5)
}
  0xb6   : > { %3095 = dma.hbm_to_vmem [thread:$0]  (!%p3807_p11), %s3814_s21, 512, %s3850_s25, %s3853_s30, %s4243_s24, %s4243_s24, %s4242_s23  }
  0xb7   : > { %p4244_p9 = scmp.ne.s32.totalorder %s4233_s17, 0 }
  0xb8   : > { %s3885_s20 = sand.u32 (!%p4244_p9), 1, %s3539_s10   ;;  %p4245_p8 = scmp.ne.s32.totalorder (!%p4244_p9), %s4230_s15, 0 }
  0xb9   : > { %380 = sbr.rel (%p4244_p9) target bundleno = 3171 (0xc63), region = 56  ;;  %s3888_s16 = sshll.u32 (!%p4244_p9), %s3885_s20, 5 }
  0xba   : > { %s383_s9 = scalar_lea.sflag (!%p4244_p9), [#allocation3], %s3885_s20  ;;  %s3892_s29 = scalar_lea.vmem (!%p4244_p9), [#allocation2], %s3888_s16 }
  0xc0   : > { %3510 = dma.done.wait (%p4245_p8), %s383_s9, 512  }
  0xc1   : > { %3512 = vsyncadd (%p4245_p8), %s383_s9, 4294966784  ;;  %s391_s17 = sand.u32 1, %s3640_s13   ;;  %s3900_s21 = scalar_lea.vmem [#allocation5], %s3888_s16 }
  0xc2   : > { %s392_s25 = scalar_lea.sflag [#allocation6], %s391_s17 }
  0xc3   : > { %3514 = dma.done.wait (%p4245_p8), %s392_s25, 512  }
  0xc4   : > { %3516 = vsyncadd (%p4245_p8), %s392_s25, 4294966784  ;;  %p4246_p11 = scmp.eq.s32.totalorder %s3640_s13, 0 }
  0xc6   : > { %3518 = dma.done.wait (%p4246_p11), [#allocation6], 512   ;;  %p4247_p7 = pmov %p4246_p11 }
  0xc8   : > { %3520 = vsyncadd (%p4247_p7), [#allocation6], 4294966784  ;;  %p4248_p12 = pmov %p4247_p7 }
  0xc9   : > { %p4249_p1 = pmov %p4247_p7 }
  0xca   : > { %3522 = dma.done.wait (%p4248_p12), [#allocation9], 1536  }
  0xcb   : > { %3524 = vsyncadd (%p4249_p1), [#allocation9], 4294965760  ;;  %p4250_p2 = pmov %p4249_p1 }
  0xcc   : > { %p4251_p13 = pmov %p4249_p1 }
  0xcd   : > { %3526 = dma.done.wait (%p4250_p2), [#allocation12], 512  }
  0xce   : > { %3528 = vsyncadd (%p4251_p13), [#allocation12], 4294966784  ;;  %vm473_vm0 = vcmask 261120   ;;  %v462_v0 = vld [vmem:[#allocation7] sm:$0xff]  ;;  %v463_v1 = vld [vmem:[#allocation7 + $0x8] sm:$0xff]  ;;  %vm685_vm1 = vcmask 64512  }
  0xcf   : > { %v464_v2 = vld [vmem:[#allocation7 + $0x10] sm:$0xff]  ;;  %v2950_v3 = vpack.c.bf16 %v463_v1, %v462_v0  ;;  %v465_v4 = vld [vmem:[#allocation7 + $0x18] sm:$0xff]  ;;  %v454_v5 = vld [vmem:[%s3892_s29] sm:$0xff]  ;;  %vm860_vm3 = vcmask 130048   ;;  %s3557_s2 = smov 96   ;;  %s3558_s4 = smov 120  }
  0xd0   : > { %v2954_v6 = vpack.c.bf16 %v465_v4, %v464_v2  ;;  %2804 = vmatprep.mubr.msk.f32.mxu1 %vm473_vm0, %v454_v5  ;;  %v575_v7 = vld [vmem:[#allocation8] sm:$0xff]  ;;  %v576_v8 = vld [vmem:[#allocation8 + $0x8] sm:$0xff]  ;;  %v577_v10 = vld [vmem:[#allocation8 + $0x10] sm:$0xff]  ;;  %s3559_s18 = smov 88   ;;  %s3560_s26 = smov 112   ;;  %vm2344_vm4 = vcmask 195584  }
  0xd1   : > { %2951 = vmatprep.subr.bf16.mxu1 %v2950_v3  ;;  %v2958_v9 = vpack.c.bf16 %v576_v8, %v575_v7  ;;  %v578_v11 = vld [vmem:[#allocation8 + $0x18] sm:$0xff]  ;;  %v455_v12 = vld [vmem:[%s3892_s29 + $0x8] sm:$0xff]  ;;  %v456_v13 = vld [vmem:[%s3892_s29 + $0x10] sm:$0xff]  ;;  %s3561_s19 = smov 80   ;;  %s3562_s22 = smov 104  }
  0xd2   : > { %2953 = vmatpush3.bf16.msra.mxu1 %v2950_v3  ;;  %v2962_v14 = vpack.c.bf16 %v578_v11, %v577_v10  ;;  %v457_v15 = vld [vmem:[%s3892_s29 + $0x18] sm:$0xff]  ;;  %v458_v16 = vld [vmem:[%s3900_s21] sm:$0xff]  ;;  %v459_v17 = vld [vmem:[%s3900_s21 + $0x8] sm:$0xff]  ;;  %s3563_s0 = smov 72   ;;  %s3564_s9 = smov 8  }
  0xd3   : > { %2955 = vmatprep.subr.bf16.mxu1 %v2954_v6  ;;  %v460_v18 = vld [vmem:[%s3900_s21 + $0x10] sm:$0xff]  ;;  %v461_v19 = vld [vmem:[%s3900_s21 + $0x18] sm:$0xff]  ;;  %v2633_v20 = vld [vmem:[%s4208_s3] ss:$0 sm:$0xff]  ;;  %s3565_s29 = smov 16   ;;  %s3566_s17 = smov 24  }
  0xd4   : > { %v2638_v28 = vld [vmem:[%s4210_s5] ss:$0 sm:$0xff]  ;;  %vm3950_vm2 = vmpackc.low %vm685_vm1, %vm685_vm1  ;;  %v684_v49 = vld [vmem:[#allocation10 + $0x8] sm:$0xff]  ;;  %s450_s15 = scalar_lea.vmem [#allocation13], %s3888_s16  ;;  %s2707_s24 = sshll.u32 %s3640_s13, 9 }
  0xd5   : > { %v683_v47 = vld [vmem:[#allocation10] sm:$0xff]  ;;  %s2476_s23 = sshll.u32 %s450_s15, 4  ;;  %s4153_s23 = int_to_ptr.vmem [resolvable:$true] %s2476_s23 }
  0xd6   : > { %2957 = vmatpush3.bf16.msra.mxu1 %v2954_v6  ;;  %s3465_s13 = scalar_lea.vmem %s4153_s23, 512 }
  0xd7   : > { %2959 = vmatprep.subr.bf16.mxu1 %v2958_v9  ;;  %p3466_p0 = scmp.ne.s32.totalorder %s4153_s23, %s3465_s13 }
  0xd9   : > { %2805 = vmatmul.mubr.msk.f32.vlgmr.msra.gmra.mrb[0].mxu1 %vm473_vm0, %v455_v12  ;;  %p3467_p4 = pnand %p3466_p0, %p3790_p10 }
  0xda   : > { %2961 = vmatpush3.bf16.msra.mxu1 %v2958_v9  ;;  %2807 = vmatprep.mubr.msk.f32.mxu1 %vm473_vm0, %v456_v13 }
  0xdb   : > { %2963 = vmatprep.subr.bf16.mxu1 %v2962_v14  ;;  %p3468_p6 = pneg %p3467_p4 }
  0xdd   : > { %2808 = vmatmul.mubr.msk.f32.gmra.mrb[2].mxu1 %vm473_vm0, %v457_v15 }
  0xde   : > { %2965 = vmatpush3.bf16.msra.mxu1 %v2962_v14  ;;  %2818 = vmatprep.mubr.msk.f32.mxu1 %vm473_vm0, %v458_v16 }
  0xe1   : > { %2819 = vmatmul.mubr.msk.f32.vlgmr.msra.gmra.mrb[4].mxu1 %vm473_vm0, %v459_v17 }
  0xe2   : > { %2821 = vmatprep.mubr.msk.f32.mxu1 %vm473_vm0, %v460_v18 }
  0xe5   : > { %2822 = vmatmul.mubr.msk.f32.gmra.mrb[6].mxu1 %vm473_vm0, %v461_v19 }
 0x1ac   : > { %v2806_v21 = vpop.f32.mrb[0].mxu1 }
 0x1ad   : > { %v552_v22 = vpop.f32.mrb[1].mxu1  ;;  %v558_v41 = vadd.f32 %v2806_v21, %v2633_v20 }
 0x1ae   : > { %v553_v23 = vadd.f32 %v2633_v20, %v552_v22 }
 0x1af   : > { %v3966_v44 = vmul.f32 0.35355338, %v558_v41 }
 0x1b0   : > { %v3937_v24 = vmul.f32 0.35355338, %v553_v23  ;;  %v2809_v25 = vpop.f32.mrb[2].mxu1 }
 0x1b1   : > { %v562_v26 = vpop.f32.mrb[3].mxu1  ;;  %v568_v45 = vadd.f32 %v2809_v25, %v2633_v20 }
 0x1b2   : > { %v563_v27 = vadd.f32 %v2633_v20, %v562_v26  ;;  %2828 = vmatprep.mubr.msk.f32.mxu0 %vm685_vm1, %v3937_v24 }
 0x1b3   : > { %v3970_v46 = vmul.f32 0.35355338, %v568_v45 }
 0x1b4   : > { %v3944_v29 = vmul.f32 0.35355338, %v563_v27  ;;  %v2820_v30 = vpop.f32.mrb[4].mxu1 }
 0x1b5   : > { %v670_v31 = vadd.f32 %v2820_v30, %v2638_v28  ;;  %v664_v32 = vpop.f32.mrb[5].mxu1 }
 0x1b6   : > { %v665_v33 = vadd.f32 %v2638_v28, %v664_v32  ;;  %2835 = vmatprep.mubr.msk.f32.mxu1 %vm685_vm1, %v3944_v29 }
 0x1b8   : > { %v2823_v35 = vpop.f32.mrb[6].mxu1  ;;  %v2966_v36 = vpack.c.bf16 %v670_v31, %v665_v33  ;;  %v3954_v37 = vpack.i.bf16 %v670_v31, %v665_v33 }
 0x1b9   : > { %v680_v38 = vadd.f32 %v2823_v35, %v2638_v28  ;;  %v674_v39 = vpop.f32.mrb[7].mxu1 }
 0x1ba   : > { %v675_v40 = vadd.f32 %v2638_v28, %v674_v39  ;;  %2968 = vmatprep.subr.msk.bf16.mxu0 %vm3950_vm2, %v2966_v36 }
 0x1bb   : > { %2971 = vmatpush3.bf16.xpose.msk.msra.mxu0 %vm3950_vm2, %v2966_v36 }
 0x1bc   : > { %v2972_v42 = vpack.c.bf16 %v680_v38, %v675_v40  ;;  %v3960_v43 = vpack.i.bf16 %v680_v38, %v675_v40 }
 0x1be   : > { %2974 = vmatprep.subr.msk.bf16.mxu1 %vm3950_vm2, %v2972_v42 }
 0x1bf   : > { %2977 = vmatpush3.bf16.xpose.msk.msra.mxu1 %vm3950_vm2, %v2972_v42 }
 0x1c2   : > { %2829 = vmatmul.mubr.msk.f32.vlgmr.msra.gmra.mrb[0].mxu0 %vm685_vm1, %v3966_v44 }
 0x1c6   : > { %2836 = vmatmul.mubr.msk.f32.vlgmr.msra.gmra.mrb[8].mxu1 %vm685_vm1, %v3970_v46 }
 0x295   : > { %v2830_v48 = vpop.f32.mrb[0].mxu0 }
 0x296   : > { %v764_v50 = vpop.f32.mrb[1].mxu0  ;;  %v770_v52 = vadd.f32 %v2830_v48, %v684_v49 }
 0x297   : > { %v765_v51 = vadd.f32 %v764_v50, %v683_v47 }
 0x298   : > { %v864_v59 = vsel %vm860_vm3, %v770_v52, -inf }
 0x299   : > { %v2837_v53 = vpop.f32.mrb[8].mxu1  ;;  %v861_v54 = vsel %vm860_vm3, %v765_v51, -inf }
 0x29a   : > { %v851_v55 = vpop.f32.mrb[9].mxu1  ;;  %862 = vmax.xlane.f32.xlu0 %v861_v54  ;;  %v857_v57 = vadd.f32 %v2837_v53, %v684_v49 }
 0x29b   : > { %v852_v56 = vadd.f32 %v851_v55, %v683_v47 }
 0x29c   : > { %v870_v60 = vsel %vm860_vm3, %v857_v57, -inf }
 0x29d   : > { %v867_v58 = vsel %vm860_vm3, %v852_v56, -inf }
 0x29e   : > { %868 = vmax.xlane.f32.xlu1 %v867_v58  ;;  %865 = vmax.xlane.f32.xlu0 %v864_v59 }
 0x2a2   : > { %871 = vmax.xlane.f32.xlu1 %v870_v60  ;;  %v1081_v60 = vld [vmem:[#allocation10 + $0x18] sm:$0xff] }
 0x2b3   : > { %3165 = vrot.lane.b32.xlu1 %v3960_v43, %s3557_s2 }
 0x2b4   : > { %3160 = vrot.lane.b32.xlu0 %v3954_v37, %s3557_s2 }
 0x2b7   : > { %3170 = vrot.lane.b32.xlu1 %v3954_v37, %s3558_s4 }
 0x2bb   : > { %3175 = vrot.lane.b32.xlu1 %v3960_v43, %s3558_s4 }
 0x327   : > { %v863_v61 = vpop.xlane.xlu0 %862 }
 0x328   : > { %v873_v62 = vsub.f32 %v765_v51, %v863_v61  ;;  %v1080_v61 = vld [vmem:[#allocation10 + $0x10] sm:$0xff] }
 0x32a   : > { %v877_v63 = vmul.f32 1.442695, %v873_v62 }
 0x32b   : > { %v869_v0 = vpop.xlane.xlu1 %868  ;;  %v866_v1 = vpop.xlane.xlu0 %865 }
 0x32c   : > { %3229 = vpow2.f32 %v877_v63  ;;  %v875_v2 = vsub.f32 %v852_v56, %v869_v0  ;;  %v874_v3 = vsub.f32 %v770_v52, %v866_v1 }
 0x32e   : > { %v881_v4 = vmul.f32 1.442695, %v875_v2  ;;  %v879_v5 = vmul.f32 1.442695, %v874_v3 }
 0x32f   : > { %v872_v6 = vpop.xlane.xlu1 %871  ;;  %v3161_v7 = vpop.permute.xlu0 %3160 }
 0x330   : > { %3231 = vpow2.f32 %v881_v4  ;;  %v876_v8 = vsub.f32 %v857_v57, %v872_v6  ;;  %v3163_v9 = vunpack.i.h.bf16 %v3161_v7  ;;  %v3162_v10 = vunpack.i.l.bf16 %v3161_v7 }
 0x331   : > { %3233 = vpow2.f32 %v879_v5 }
 0x332   : > { %v883_v11 = vmul.f32 1.442695, %v876_v8  ;;  %v2978_v12 = vpack.c.bf16 %v3163_v9, %v3162_v10 }
 0x333   : > { %v3166_v13 = vpop.permute.xlu1 %3165 }
 0x334   : > { %3235 = vpow2.f32 %v883_v11  ;;  %v3168_v14 = vunpack.i.h.bf16 %v3166_v13  ;;  %v3167_v15 = vunpack.i.l.bf16 %v3166_v13  ;;  %2979 = vmatprep.subr.bf16.mxu0 %v2978_v12 }
 0x335   : > { %2981 = vmatpush3.bf16.msra.mxu0 %v2978_v12 }
 0x336   : > { %v3230_v16 = vpop.eup %3229  ;;  %v2982_v17 = vpack.c.bf16 %v3168_v14, %v3167_v15 }
 0x337   : > { %v3171_v18 = vpop.permute.xlu1 %3170  ;;  %v885_v19 = vsel %vm860_vm3, %v3230_v16, 0.0 }
 0x338   : > { %v3173_v20 = vunpack.i.h.bf16 %v3171_v18  ;;  %v3172_v21 = vunpack.i.l.bf16 %v3171_v18  ;;  %2983 = vmatprep.subr.bf16.mxu1 %v2982_v17  ;;  %886 = vadd.xlane.f32.xlu0 %v885_v19 }
 0x339   : > { %2985 = vmatpush3.bf16.msra.mxu1 %v2982_v17 }
 0x33a   : > { %v3232_v22 = vpop.eup %3231  ;;  %v2986_v23 = vpack.c.bf16 %v3173_v20, %v3172_v21 }
 0x33b   : > { %v3234_v25 = vpop.eup %3233  ;;  %v3176_v26 = vpop.permute.xlu1 %3175  ;;  %v891_v27 = vsel %vm860_vm3, %v3232_v22, 0.0 }
 0x33c   : > { %v3178_v28 = vunpack.i.h.bf16 %v3176_v26  ;;  %v3177_v30 = vunpack.i.l.bf16 %v3176_v26  ;;  %892 = vadd.xlane.f32.xlu0 %v891_v27  ;;  %v888_v31 = vsel %vm860_vm3, %v3234_v25, 0.0  ;;  %2988 = vmatprep.subr.msk.bf16.mxu0 %vm3950_vm2, %v2986_v23 }
 0x33d   : > { %889 = vadd.xlane.f32.xlu1 %v888_v31 }
 0x33e   : > { %v3236_v32 = vpop.eup %3235  ;;  %v2992_v33 = vpack.c.bf16 %v3178_v28, %v3177_v30 }
 0x33f   : > { %v894_v35 = vsel %vm860_vm3, %v3236_v32, 0.0 }
 0x340   : > { %2994 = vmatprep.subr.msk.bf16.mxu1 %vm3950_vm2, %v2992_v33 }
 0x341   : > { %895 = vadd.xlane.f32.xlu1 %v894_v35 }
 0x352   : > { %1084 = vrot.lane.b32.xlu1 %v3966_v44, %s3558_s4  ;;  %1082 = vrot.lane.b32.xlu0 %v3937_v24, %s3558_s4 }
 0x356   : > { %1175 = vrot.lane.b32.xlu1 %v3970_v46, %s3558_s4  ;;  %1173 = vrot.lane.b32.xlu0 %v3944_v29, %s3558_s4  ;;  %s4254_s4 = sld [smem:[#allocation25_spill]] }
 0x35c   : > { %s4158_s16 = scalar_lea.hbm %s4254_s4, %s2707_s24 }
 0x3c5   : > { %v887_v36 = vpop.xlane.xlu0 %886 }
 0x3c6   : > { %3237 = vrcp.f32 %v887_v36 }
 0x3c9   : > { %v893_v38 = vpop.xlane.xlu0 %892 }
 0x3ca   : > { %v890_v39 = vpop.xlane.xlu1 %889  ;;  %3239 = vrcp.f32 %v893_v38 }
 0x3cb   : > { %3241 = vrcp.f32 %v890_v39 }
 0x3cd   : > { %v1083_v50 = vpop.permute.xlu0 %1082 }
 0x3ce   : > { %v896_v40 = vpop.xlane.xlu1 %895 }
 0x3cf   : > { %3243 = vrcp.f32 %v896_v40 }
 0x3d0   : > { %v3238_v41 = vpop.eup %3237 }
 0x3d1   : > { %v898_v42 = vmul.f32 %v3238_v41, %v3230_v16  ;;  %v1174_v53 = vpop.permute.xlu0 %1173 }
 0x3d2   : > { %v1085_v54 = vpop.permute.xlu1 %1084 }
 0x3d3   : > { %2842 = vmatprep.mubr.msk.f32.mxu0 %vm860_vm3, %v898_v42 }
 0x3d4   : > { %v3240_v45 = vpop.eup %3239 }
 0x3d5   : > { %v3242_v47 = vpop.eup %3241  ;;  %v902_v48 = vmul.f32 %v3240_v45, %v3232_v22 }
 0x3d6   : > { %v900_v49 = vmul.f32 %v3242_v47, %v3234_v25  ;;  %v1176_v55 = vpop.permute.xlu1 %1175 }
 0x3d7   : > { %2849 = vmatprep.mubr.msk.f32.mxu1 %vm860_vm3, %v902_v48 }
 0x3d8   : > { %2843 = vmatmul.mubr.msk.f32.vlgmr.msra.gmra.mrb[2].mxu0 %vm860_vm3, %v900_v49 }
 0x3d9   : > { %v3244_v51 = vpop.eup %3243  ;;  %2991 = vmatpush3.bf16.xpose.msk.msra.mxu0 %vm3950_vm2, %v2986_v23  ;;  %2856 = vmatprep.mubr.msk.f32.mxu0 %vm685_vm1, %v1083_v50 }
 0x3da   : > { %v904_v52 = vmul.f32 %v3244_v51, %v3236_v32 }
 0x3dc   : > { %2850 = vmatmul.mubr.msk.f32.vlgmr.msra.gmra.mrb[10].mxu1 %vm860_vm3, %v904_v52 }
 0x3dd   : > { %2997 = vmatpush3.bf16.xpose.msk.msra.mxu1 %vm3950_vm2, %v2992_v33  ;;  %2863 = vmatprep.mubr.msk.f32.mxu1 %vm685_vm1, %v1174_v53 }
 0x3e0   : > { %2857 = vmatmul.mubr.msk.f32.vlgmr.msra.gmra.mrb[4].mxu0 %vm685_vm1, %v1085_v54 }
 0x3e4   : > { %2864 = vmatmul.mubr.msk.f32.vlgmr.msra.gmra.mrb[12].mxu1 %vm685_vm1, %v1176_v55 }
 0x4ab   : > { %v4012_v56 = vpop.f32.mrb[2].mxu0 }
 0x4ac   : > { %v4014_v57 = vpop.f32.mrb[3].mxu0 }
 0x4af   : > { %v4016_v58 = vpop.f32.mrb[10].mxu1 }
 0x4b0   : > { %v4018_v59 = vpop.f32.mrb[11].mxu1 }
 0x4b3   : > { %v2858_v62 = vpop.f32.mrb[4].mxu0 }
 0x4b4   : > { %v1170_v63 = vadd.f32 %v2858_v62, %v1081_v60  ;;  %v1164_v0 = vpop.f32.mrb[5].mxu0 }
 0x4b5   : > { %v1165_v1 = vadd.f32 %v1164_v0, %v1080_v61 }
 0x4b6   : > { %v1267_v2 = vsel %vm860_vm3, %v1170_v63, -inf }
 0x4b7   : > { %v2865_v3 = vpop.f32.mrb[12].mxu1  ;;  %1268 = vmax.xlane.f32.xlu1 %v1267_v2  ;;  %v1264_v4 = vsel %vm860_vm3, %v1165_v1, -inf }
 0x4b8   : > { %v1255_v5 = vpop.f32.mrb[13].mxu1  ;;  %1265 = vmax.xlane.f32.xlu0 %v1264_v4  ;;  %v1261_v7 = vadd.f32 %v2865_v3, %v1081_v60 }
 0x4b9   : > { %v1256_v6 = vadd.f32 %v1255_v5, %v1080_v61 }
 0x4ba   : > { %v1273_v9 = vsel %vm860_vm3, %v1261_v7, -inf }
 0x4bb   : > { %v1270_v8 = vsel %vm860_vm3, %v1256_v6, -inf }
 0x4bc   : > { %1271 = vmax.xlane.f32.xlu0 %v1270_v8 }
 0x4c0   : > { %1274 = vmax.xlane.f32.xlu0 %v1273_v9 }
 0x4c8   : > { %3185 = vrot.lane.b32.xlu1 %v3960_v43, %s3559_s18 }
 0x4cc   : > { %3190 = vrot.lane.b32.xlu1 %v3954_v37, %s3560_s26 }
 0x4d0   : > { %3195 = vrot.lane.b32.xlu1 %v3960_v43, %s3560_s26 }
 0x4d6   : > { %3180 = vrot.lane.b32.xlu0 %v3954_v37, %s3559_s18  ;;  %s2462_s18 = scalar_lea.sflag [#allocation4], %s3885_s20 }
 0x544   : > { %v1269_v10 = vpop.xlane.xlu1 %1268 }
 0x545   : > { %v1277_v11 = vsub.f32 %v1170_v63, %v1269_v10  ;;  %v1266_v12 = vpop.xlane.xlu0 %1265 }
 0x546   : > { %v1276_v13 = vsub.f32 %v1165_v1, %v1266_v12 }
 0x547   : > { %v1282_v14 = vmul.f32 1.442695, %v1277_v11  ;;  %v1484_v11 = vld [vmem:[#allocation10 + $0x28] sm:$0xff] }
 0x548   : > { %v1280_v15 = vmul.f32 1.442695, %v1276_v13  ;;  %v3186_v16 = vpop.permute.xlu1 %3185  ;;  %v1483_v13 = vld [vmem:[#allocation10 + $0x20] sm:$0xff] }
 0x549   : > { %3245 = vpow2.f32 %v1282_v14  ;;  %v3188_v17 = vunpack.i.h.bf16 %v3186_v16  ;;  %v3187_v18 = vunpack.i.l.bf16 %v3186_v16  ;;  %v1272_v19 = vpop.xlane.xlu0 %1271 }
 0x54a   : > { %3247 = vpow2.f32 %v1280_v15  ;;  %v1278_v20 = vsub.f32 %v1256_v6, %v1272_v19 }
 0x54b   : > { %v3002_v21 = vpack.c.bf16 %v3188_v17, %v3187_v18 }
 0x54c   : > { %v1284_v22 = vmul.f32 1.442695, %v1278_v20  ;;  %v3191_v23 = vpop.permute.xlu1 %3190 }
 0x54d   : > { %3003 = vmatprep.subr.bf16.mxu1 %v3002_v21  ;;  %v1275_v25 = vpop.xlane.xlu0 %1274  ;;  %v3193_v30 = vunpack.i.h.bf16 %v3191_v23  ;;  %v3192_v35 = vunpack.i.l.bf16 %v3191_v23 }
 0x54e   : > { %3249 = vpow2.f32 %v1284_v22  ;;  %v1279_v26 = vsub.f32 %v1261_v7, %v1275_v25  ;;  %3005 = vmatpush3.bf16.msra.mxu1 %v3002_v21 }
 0x54f   : > { %v3006_v48 = vpack.c.bf16 %v3193_v30, %v3192_v35 }
 0x550   : > { %v1286_v27 = vmul.f32 1.442695, %v1279_v26  ;;  %v3196_v28 = vpop.permute.xlu1 %3195 }
 0x551   : > { %v3198_v31 = vunpack.i.h.bf16 %v3196_v28  ;;  %v3197_v32 = vunpack.i.l.bf16 %v3196_v28  ;;  %v3181_v33 = vpop.permute.xlu0 %3180 }
 0x552   : > { %3251 = vpow2.f32 %v1286_v27  ;;  %v3183_v36 = vunpack.i.h.bf16 %v3181_v33  ;;  %v3182_v38 = vunpack.i.l.bf16 %v3181_v33 }
 0x553   : > { %v3246_v39 = vpop.eup %3245  ;;  %v3012_v40 = vpack.c.bf16 %v3198_v31, %v3197_v32 }
 0x554   : > { %v3248_v41 = vpop.eup %3247  ;;  %v2998_v42 = vpack.c.bf16 %v3183_v36, %v3182_v38  ;;  %v1291_v45 = vsel %vm860_vm3, %v3246_v39, 0.0 }
 0x555   : > { %1292 = vadd.xlane.f32.xlu1 %v1291_v45  ;;  %3014 = vmatprep.subr.msk.bf16.mxu1 %vm3950_vm2, %v3012_v40  ;;  %v1288_v47 = vsel %vm860_vm3, %v3248_v41, 0.0 }
 0x556   : > { %1289 = vadd.xlane.f32.xlu0 %v1288_v47  ;;  %2999 = vmatprep.subr.bf16.mxu0 %v2998_v42 }
 0x557   : > { %3001 = vmatpush3.bf16.msra.mxu0 %v2998_v42 }
 0x558   : > { %v3250_v49 = vpop.eup %3249  ;;  %3008 = vmatprep.subr.msk.bf16.mxu0 %vm3950_vm2, %v3006_v48 }
 0x559   : > { %v1294_v50 = vsel %vm860_vm3, %v3250_v49, 0.0 }
 0x55a   : > { %1295 = vadd.xlane.f32.xlu0 %v1294_v50 }
 0x55c   : > { %v3252_v51 = vpop.eup %3251 }
 0x55d   : > { %v1297_v52 = vsel %vm860_vm3, %v3252_v51, 0.0 }
 0x55e   : > { %1298 = vadd.xlane.f32.xlu1 %v1297_v52 }
 0x56f   : > { %1487 = vrot.lane.b32.xlu1 %v3966_v44, %s3560_s26 }
 0x570   : > { %1485 = vrot.lane.b32.xlu0 %v3937_v24, %s3560_s26 }
 0x573   : > { %1578 = vrot.lane.b32.xlu1 %v3970_v46, %s3560_s26 }
 0x574   : > { %1576 = vrot.lane.b32.xlu0 %v3944_v29, %s3560_s26  ;;  %s3567_s26 = smov [#allocation13]  }
 0x5e2   : > { %v1293_v53 = vpop.xlane.xlu1 %1292 }
 0x5e3   : > { %3253 = vrcp.f32 %v1293_v53  ;;  %v1290_v54 = vpop.xlane.xlu0 %1289 }
 0x5e4   : > { %3255 = vrcp.f32 %v1290_v54 }
 0x5e7   : > { %v1296_v55 = vpop.xlane.xlu0 %1295 }
 0x5e8   : > { %3257 = vrcp.f32 %v1296_v55 }
 0x5eb   : > { %v1299_v60 = vpop.xlane.xlu1 %1298  ;;  %v1486_v2 = vpop.permute.xlu0 %1485 }
 0x5ec   : > { %3259 = vrcp.f32 %v1299_v60 }
 0x5ed   : > { %v3254_v61 = vpop.eup %3253 }
 0x5ee   : > { %v3256_v62 = vpop.eup %3255  ;;  %v1303_v0 = vmul.f32 %v3254_v61, %v3246_v39 }
 0x5ef   : > { %v1301_v63 = vmul.f32 %v3256_v62, %v3248_v41  ;;  %v1488_v6 = vpop.permute.xlu1 %1487  ;;  %v1577_v7 = vpop.permute.xlu0 %1576 }
 0x5f1   : > { %2870 = vmatprep.mubr.msk.f32.mxu0 %vm860_vm3, %v1301_v63 }
 0x5f2   : > { %v3258_v1 = vpop.eup %3257  ;;  %2871 = vmatmul.mubr.msk.f32.vlgmr.msra.gmra.mrb[6].mxu0 %vm860_vm3, %v1303_v0 }
 0x5f3   : > { %3011 = vmatpush3.bf16.xpose.msk.msra.mxu0 %vm3950_vm2, %v3006_v48  ;;  %2884 = vmatprep.mubr.msk.f32.mxu0 %vm685_vm1, %v1486_v2  ;;  %v1305_v3 = vmul.f32 %v3258_v1, %v3250_v49  ;;  %v1579_v8 = vpop.permute.xlu1 %1578 }
 0x5f5   : > { %2877 = vmatprep.mubr.msk.f32.mxu1 %vm860_vm3, %v1305_v3 }
 0x5f6   : > { %v3260_v4 = vpop.eup %3259 }
 0x5f7   : > { %v1307_v5 = vmul.f32 %v3260_v4, %v3252_v51 }
 0x5f9   : > { %2878 = vmatmul.mubr.msk.f32.vlgmr.msra.gmra.mrb[14].mxu1 %vm860_vm3, %v1307_v5 }
 0x5fa   : > { %2885 = vmatmul.mubr.msk.f32.vlgmr.msra.gmra.mrb[8].mxu0 %vm685_vm1, %v1488_v6  ;;  %3017 = vmatpush3.bf16.xpose.msk.msra.mxu1 %vm3950_vm2, %v3012_v40 }
 0x5fb   : > { %2891 = vmatprep.mubr.msk.f32.mxu1 %vm685_vm1, %v1577_v7 }
 0x601   : > { %2892 = vmatmul.mubr.msk.f32.vlgmr.msra.gmra.mrb[16].mxu1 %vm685_vm1, %v1579_v8 }
 0x6c5   : > { %v4058_v9 = vpop.f32.mrb[6].mxu0 }
 0x6c6   : > { %v4060_v10 = vpop.f32.mrb[7].mxu0 }
 0x6cc   : > { %v4062_v12 = vpop.f32.mrb[14].mxu1 }
 0x6cd   : > { %v2886_v14 = vpop.f32.mrb[8].mxu0  ;;  %v4064_v15 = vpop.f32.mrb[15].mxu1 }
 0x6ce   : > { %v1573_v16 = vadd.f32 %v2886_v14, %v1484_v11  ;;  %v1567_v17 = vpop.f32.mrb[9].mxu0 }
 0x6cf   : > { %v1568_v18 = vadd.f32 %v1567_v17, %v1483_v13 }
 0x6d0   : > { %v1670_v19 = vsel %vm860_vm3, %v1573_v16, -inf }
 0x6d1   : > { %1671 = vmax.xlane.f32.xlu1 %v1670_v19  ;;  %v1667_v20 = vsel %vm860_vm3, %v1568_v18, -inf }
 0x6d2   : > { %1668 = vmax.xlane.f32.xlu0 %v1667_v20 }
 0x6d4   : > { %v2893_v21 = vpop.f32.mrb[16].mxu1 }
 0x6d5   : > { %v1658_v22 = vpop.f32.mrb[17].mxu1  ;;  %v1664_v25 = vadd.f32 %v2893_v21, %v1484_v11 }
 0x6d6   : > { %v1659_v23 = vadd.f32 %v1658_v22, %v1483_v13 }
 0x6d7   : > { %v1676_v27 = vsel %vm860_vm3, %v1664_v25, -inf }
 0x6d8   : > { %v1673_v26 = vsel %vm860_vm3, %v1659_v23, -inf }
 0x6d9   : > { %1674 = vmax.xlane.f32.xlu0 %v1673_v26 }
 0x6dd   : > { %1677 = vmax.xlane.f32.xlu0 %v1676_v27 }
 0x6e2   : > { %3205 = vrot.lane.b32.xlu1 %v3960_v43, %s3561_s19 }
 0x6e6   : > { %3210 = vrot.lane.b32.xlu1 %v3954_v37, %s3562_s22 }
 0x6ea   : > { %3215 = vrot.lane.b32.xlu1 %v3960_v43, %s3562_s22 }
 0x6f3   : > { %3200 = vrot.lane.b32.xlu0 %v3954_v37, %s3561_s19  ;;  %s3469_s19 = sshll.u32 %s3567_s26, 4  ;;  %s3470_s19 = int_to_ptr.vmem [resolvable:$false] %s3469_s19 }
 0x6f4   : > { %p3472_p3 = scmp.lt.s32.totalorder %s4153_s23, %s3470_s19 }
 0x75e   : > { %v1672_v28 = vpop.xlane.xlu1 %1671 }
 0x75f   : > { %v1680_v30 = vsub.f32 %v1573_v16, %v1672_v28  ;;  %v1669_v31 = vpop.xlane.xlu0 %1668 }
 0x760   : > { %v1679_v32 = vsub.f32 %v1568_v18, %v1669_v31  ;;  %v1886_v31 = vld [vmem:[#allocation10 + $0x30] sm:$0xff] }
 0x761   : > { %v1685_v33 = vmul.f32 1.442695, %v1680_v30  ;;  %v1887_v30 = vld [vmem:[#allocation10 + $0x38] sm:$0xff] }
 0x762   : > { %v1683_v35 = vmul.f32 1.442695, %v1679_v32  ;;  %v3206_v36 = vpop.permute.xlu1 %3205 }
 0x763   : > { %3261 = vpow2.f32 %v1685_v33  ;;  %v3208_v38 = vunpack.i.h.bf16 %v3206_v36  ;;  %v3207_v39 = vunpack.i.l.bf16 %v3206_v36 }
 0x764   : > { %3263 = vpow2.f32 %v1683_v35 }
 0x765   : > { %v3022_v40 = vpack.c.bf16 %v3208_v38, %v3207_v39 }
 0x766   : > { %v3211_v41 = vpop.permute.xlu1 %3210  ;;  %v1675_v42 = vpop.xlane.xlu0 %1674 }
 0x767   : > { %v1681_v45 = vsub.f32 %v1659_v23, %v1675_v42  ;;  %3023 = vmatprep.subr.bf16.mxu1 %v3022_v40  ;;  %v3213_v61 = vunpack.i.h.bf16 %v3211_v41  ;;  %v3212_v62 = vunpack.i.l.bf16 %v3211_v41 }
 0x768   : > { %3025 = vmatpush3.bf16.msra.mxu1 %v3022_v40 }
 0x769   : > { %v1687_v47 = vmul.f32 1.442695, %v1681_v45  ;;  %v3026_v5 = vpack.c.bf16 %v3213_v61, %v3212_v62 }
 0x76a   : > { %v3216_v48 = vpop.permute.xlu1 %3215  ;;  %v1678_v49 = vpop.xlane.xlu0 %1677 }
 0x76b   : > { %3265 = vpow2.f32 %v1687_v47  ;;  %v3218_v50 = vunpack.i.h.bf16 %v3216_v48  ;;  %v3217_v51 = vunpack.i.l.bf16 %v3216_v48  ;;  %v1682_v52 = vsub.f32 %v1664_v25, %v1678_v49 }
 0x76d   : > { %v3262_v53 = vpop.eup %3261  ;;  %v3032_v54 = vpack.c.bf16 %v3218_v50, %v3217_v51  ;;  %v1689_v55 = vmul.f32 1.442695, %v1682_v52 }
 0x76e   : > { %v3264_v60 = vpop.eup %3263  ;;  %v3201_v63 = vpop.permute.xlu0 %3200  ;;  %v1694_v0 = vsel %vm860_vm3, %v3262_v53, 0.0 }
 0x76f   : > { %3267 = vpow2.f32 %v1689_v55  ;;  %v3203_v1 = vunpack.i.h.bf16 %v3201_v63  ;;  %v3202_v2 = vunpack.i.l.bf16 %v3201_v63  ;;  %1695 = vadd.xlane.f32.xlu1 %v1694_v0  ;;  %3034 = vmatprep.subr.msk.bf16.mxu1 %vm3950_vm2, %v3032_v54  ;;  %v1691_v3 = vsel %vm860_vm3, %v3264_v60, 0.0 }
 0x770   : > { %1692 = vadd.xlane.f32.xlu0 %v1691_v3 }
 0x771   : > { %v3018_v4 = vpack.c.bf16 %v3203_v1, %v3202_v2 }
 0x773   : > { %3019 = vmatprep.subr.bf16.mxu0 %v3018_v4 }
 0x774   : > { %3021 = vmatpush3.bf16.msra.mxu0 %v3018_v4 }
 0x775   : > { %v3266_v6 = vpop.eup %3265  ;;  %3028 = vmatprep.subr.msk.bf16.mxu0 %vm3950_vm2, %v3026_v5 }
 0x776   : > { %v1697_v7 = vsel %vm860_vm3, %v3266_v6, 0.0 }
 0x777   : > { %1698 = vadd.xlane.f32.xlu0 %v1697_v7 }
 0x779   : > { %v3268_v8 = vpop.eup %3267 }
 0x77a   : > { %v1700_v11 = vsel %vm860_vm3, %v3268_v8, 0.0 }
 0x77b   : > { %1701 = vadd.xlane.f32.xlu1 %v1700_v11 }
 0x78c   : > { %1890 = vrot.lane.b32.xlu1 %v3966_v44, %s3562_s22 }
 0x78d   : > { %1888 = vrot.lane.b32.xlu0 %v3937_v24, %s3562_s22 }
 0x790   : > { %1981 = vrot.lane.b32.xlu1 %v3970_v46, %s3562_s22 }
 0x791   : > { %1979 = vrot.lane.b32.xlu0 %v3944_v29, %s3562_s22  ;;  %s3471_s22 = scalar_lea.vmem %s3470_s19, 1024 }
 0x792   : > { %p3473_p5 = scmp.lt.s32.totalorder %s3471_s22, %s3465_s13 }
 0x794   : > { %p3474_p9 = por %p3473_p5, %p3472_p3 }
 0x796   : > { %p3475_p8 = pnand %p3474_p9, %p3468_p6 }
 0x7fc   : > { %v1696_v13 = vpop.xlane.xlu1 %1695 }
 0x7fd   : > { %3269 = vrcp.f32 %v1696_v13  ;;  %v1693_v14 = vpop.xlane.xlu0 %1692 }
 0x7fe   : > { %3271 = vrcp.f32 %v1693_v14 }
 0x804   : > { %v1699_v16 = vpop.xlane.xlu0 %1698 }
 0x805   : > { %3273 = vrcp.f32 %v1699_v16 }
 0x807   : > { %v3270_v17 = vpop.eup %3269 }
 0x808   : > { %v3272_v18 = vpop.eup %3271  ;;  %v1702_v19 = vpop.xlane.xlu1 %1701  ;;  %v1706_v20 = vmul.f32 %v3270_v17, %v3262_v53 }
 0x809   : > { %3275 = vrcp.f32 %v1702_v19  ;;  %v1704_v44 = vmul.f32 %v3272_v18, %v3264_v60  ;;  %v1889_v24 = vpop.permute.xlu0 %1888 }
 0x80b   : > { %2898 = vmatprep.mubr.msk.f32.mxu0 %vm860_vm3, %v1704_v44 }
 0x80c   : > { %2899 = vmatmul.mubr.msk.f32.vlgmr.msra.gmra.mrb[10].mxu0 %vm860_vm3, %v1706_v20  ;;  %v1891_v22 = vpop.permute.xlu1 %1890 }
 0x80d   : > { %3031 = vmatpush3.bf16.xpose.msk.msra.mxu0 %vm3950_vm2, %v3026_v5  ;;  %2912 = vmatprep.mubr.msk.f32.mxu0 %vm685_vm1, %v1889_v24  ;;  %v1980_v25 = vpop.permute.xlu0 %1979 }
 0x80f   : > { %v3274_v29 = vpop.eup %3273 }
 0x810   : > { %v1708_v46 = vmul.f32 %v3274_v29, %v3266_v6  ;;  %v1982_v26 = vpop.permute.xlu1 %1981 }
 0x812   : > { %2905 = vmatprep.mubr.msk.f32.mxu1 %vm860_vm3, %v1708_v46 }
 0x813   : > { %v3276_v21 = vpop.eup %3275 }
 0x814   : > { %v1710_v23 = vmul.f32 %v3276_v21, %v3268_v8  ;;  %2913 = vmatmul.mubr.msk.f32.vlgmr.msra.gmra.mrb[12].mxu0 %vm685_vm1, %v1891_v22 }
 0x816   : > { %2906 = vmatmul.mubr.msk.f32.vlgmr.msra.gmra.mrb[18].mxu1 %vm860_vm3, %v1710_v23 }
 0x817   : > { %3037 = vmatpush3.bf16.xpose.msk.msra.mxu1 %vm3950_vm2, %v3032_v54  ;;  %2919 = vmatprep.mubr.msk.f32.mxu1 %vm685_vm1, %v1980_v25  ;;  %v2349_v25 = vld [vmem:[#allocation11] sm:$0xff] }
 0x81e   : > { %2920 = vmatmul.mubr.msk.f32.vlgmr.msra.gmra.mrb[20].mxu1 %vm685_vm1, %v1982_v26  ;;  %v2350_v26 = vld [vmem:[#allocation11 + $0x8] sm:$0xff] }
 0x8df   : > { %v2900_v27 = vpop.f32.mrb[10].mxu0 }
 0x8e0   : > { %v1789_v28 = vpop.f32.mrb[11].mxu0 }
 0x8e7   : > { %v2914_v32 = vpop.f32.mrb[12].mxu0 }
 0x8e8   : > { %v1976_v33 = vadd.f32 %v2914_v32, %v1887_v30  ;;  %v1970_v35 = vpop.f32.mrb[13].mxu0 }
 0x8e9   : > { %v1971_v36 = vadd.f32 %v1970_v35, %v1886_v31  ;;  %v2907_v38 = vpop.f32.mrb[18].mxu1 }
 0x8ea   : > { %v1876_v39 = vpop.f32.mrb[19].mxu1  ;;  %v2073_v40 = vsel %vm860_vm3, %v1976_v33, -inf }
 0x8eb   : > { %2074 = vmax.xlane.f32.xlu1 %v2073_v40  ;;  %v2070_v34 = vsel %vm860_vm3, %v1971_v36, -inf }
 0x8ec   : > { %2071 = vmax.xlane.f32.xlu0 %v2070_v34 }
 0x8f1   : > { %v2921_v41 = vpop.f32.mrb[20].mxu1 }
 0x8f2   : > { %v2061_v42 = vpop.f32.mrb[21].mxu1  ;;  %v2067_v47 = vadd.f32 %v2921_v41, %v1887_v30  ;;  %v2352_v30 = vld [vmem:[#allocation11 + $0x18] sm:$0xff] }
 0x8f3   : > { %v2062_v45 = vadd.f32 %v2061_v42, %v1886_v31 }
 0x8f4   : > { %v2079_v49 = vsel %vm860_vm3, %v2067_v47, -inf }
 0x8f5   : > { %v2076_v48 = vsel %vm860_vm3, %v2062_v45, -inf }
 0x8f6   : > { %2077 = vmax.xlane.f32.xlu0 %v2076_v48 }
 0x8fa   : > { %2080 = vmax.xlane.f32.xlu0 %v2079_v49 }
 0x978   : > { %v2075_v50 = vpop.xlane.xlu1 %2074 }
 0x979   : > { %v2083_v51 = vsub.f32 %v1976_v33, %v2075_v50  ;;  %v2072_v52 = vpop.xlane.xlu0 %2071 }
 0x97a   : > { %v2082_v53 = vsub.f32 %v1971_v36, %v2072_v52 }
 0x97b   : > { %v2088_v54 = vmul.f32 1.442695, %v2083_v51 }
 0x97c   : > { %v2086_v55 = vmul.f32 1.442695, %v2082_v53 }
 0x97d   : > { %3277 = vpow2.f32 %v2088_v54 }
 0x97e   : > { %3279 = vpow2.f32 %v2086_v55 }
 0x983   : > { %v2078_v60 = vpop.xlane.xlu0 %2077 }
 0x984   : > { %v2084_v61 = vsub.f32 %v2062_v45, %v2078_v60 }
 0x986   : > { %v2090_v62 = vmul.f32 1.442695, %v2084_v61 }
 0x987   : > { %v3278_v63 = vpop.eup %3277  ;;  %v2081_v0 = vpop.xlane.xlu0 %2080 }
 0x988   : > { %v3280_v1 = vpop.eup %3279  ;;  %3281 = vpow2.f32 %v2090_v62  ;;  %v2085_v2 = vsub.f32 %v2067_v47, %v2081_v0  ;;  %v2097_v3 = vsel %vm860_vm3, %v3278_v63, 0.0 }
 0x989   : > { %2098 = vadd.xlane.f32.xlu1 %v2097_v3  ;;  %v2094_v4 = vsel %vm860_vm3, %v3280_v1, 0.0 }
 0x98a   : > { %v2092_v5 = vmul.f32 1.442695, %v2085_v2  ;;  %2095 = vadd.xlane.f32.xlu0 %v2094_v4 }
 0x98c   : > { %3283 = vpow2.f32 %v2092_v5 }
 0x992   : > { %v3282_v6 = vpop.eup %3281 }
 0x993   : > { %v2100_v7 = vsel %vm860_vm3, %v3282_v6, 0.0 }
 0x994   : > { %2101 = vadd.xlane.f32.xlu0 %v2100_v7 }
 0x996   : > { %v3284_v8 = vpop.eup %3283 }
 0x997   : > { %v2103_v11 = vsel %vm860_vm3, %v3284_v8, 0.0 }
 0x998   : > { %2104 = vadd.xlane.f32.xlu1 %v2103_v11 }
 0x9a9   : > { %3225 = vrot.lane.b32.xlu1 %v3960_v43, %s3563_s0 }
 0x9aa   : > { %3220 = vrot.lane.b32.xlu0 %v3954_v37, %s3563_s0 }
 0x9ad   : > { %2292 = vrot.lane.b32.xlu1 %v4060_v10, %s3564_s9 }
 0x9ae   : > { %2308 = vrot.lane.b32.xlu0 %v1789_v28, %s3565_s29  ;;  %v3046_v28 = vpack.c.bf16 %v2350_v26, %v2349_v25 }
 0x9b1   : > { %2294 = vrot.lane.b32.xlu1 %v4058_v9, %s3564_s9 }
 0x9b2   : > { %2296 = vrot.lane.b32.xlu0 %v4064_v15, %s3564_s9 }
 0x9b5   : > { %2310 = vrot.lane.b32.xlu1 %v2900_v27, %s3565_s29  ;;  %v2351_v27 = vld [vmem:[#allocation11 + $0x10] sm:$0xff] }
 0x9b6   : > { %2312 = vrot.lane.b32.xlu0 %v1876_v39, %s3565_s29  ;;  %v3050_v31 = vpack.c.bf16 %v2352_v30, %v2351_v27 }
 0x9b9   : > { %2298 = vrot.lane.b32.xlu1 %v4062_v12, %s3564_s9 }
 0x9bd   : > { %2314 = vrot.lane.b32.xlu1 %v2907_v38, %s3565_s29 }
 0xa16   : > { %v2099_v37 = vpop.xlane.xlu1 %2098 }
 0xa17   : > { %v2096_v43 = vpop.xlane.xlu0 %2095 }
 0xa18   : > { %3285 = vrcp.f32 %v2096_v43 }
 0xa19   : > { %3287 = vrcp.f32 %v2099_v37 }
 0xa21   : > { %v2102_v13 = vpop.xlane.xlu0 %2101 }
 0xa22   : > { %v3286_v10 = vpop.eup %3285  ;;  %3289 = vrcp.f32 %v2102_v13 }
 0xa23   : > { %v2107_v14 = vmul.f32 %v3286_v10, %v3280_v1  ;;  %v3288_v19 = vpop.eup %3287 }
 0xa24   : > { %v2109_v29 = vmul.f32 %v3288_v19, %v3278_v63 }
 0xa25   : > { %v2105_v16 = vpop.xlane.xlu1 %2104  ;;  %2926 = vmatprep.mubr.msk.f32.mxu0 %vm860_vm3, %v2107_v14  ;;  %v3221_v9 = vpop.permute.xlu0 %3220 }
 0xa26   : > { %3291 = vrcp.f32 %v2105_v16  ;;  %v3223_v15 = vunpack.i.h.bf16 %v3221_v9  ;;  %v3222_v17 = vunpack.i.l.bf16 %v3221_v9 }
 0xa28   : > { %v3038_v18 = vpack.c.bf16 %v3223_v15, %v3222_v17 }
 0xa29   : > { %v3226_v44 = vpop.permute.xlu1 %3225  ;;  %v2309_v34 = vpop.permute.xlu0 %2308 }
 0xa2a   : > { %v3228_v12 = vunpack.i.h.bf16 %v3226_v44  ;;  %v3227_v20 = vunpack.i.l.bf16 %v3226_v44  ;;  %3039 = vmatprep.subr.bf16.mxu0 %v3038_v18 }
 0xa2b   : > { %3041 = vmatpush3.bf16.msra.mxu0 %v3038_v18 }
 0xa2c   : > { %v3290_v24 = vpop.eup %3289  ;;  %v3042_v46 = vpack.c.bf16 %v3228_v12, %v3227_v20  ;;  %3047 = vmatprep.subr.bf16.mxu0 %v3046_v28 }
 0xa2d   : > { %v2111_v21 = vmul.f32 %v3290_v24, %v3282_v6  ;;  %v2293_v38 = vpop.permute.xlu1 %2292  ;;  %v2297_v42 = vpop.permute.xlu0 %2296 }
 0xa2e   : > { %2927 = vmatmul.mubr.msk.f32.vlgmr.msra.gmra.mrb[14].mxu0 %vm860_vm3, %v2109_v29  ;;  %3043 = vmatprep.subr.bf16.mxu1 %v3042_v46  ;;  %v2336_v48 = vsel %vm685_vm1, %v4014_v57, %v2293_v38  ;;  %v2338_v57 = vsel %vm685_vm1, %v4018_v59, %v2297_v42  ;;  %v2691_v59 = vld [vmem:[%s4213_s8] ss:$0 sm:$0xff] }
 0xa2f   : > { %3045 = vmatpush3.bf16.msra.mxu1 %v3042_v46  ;;  %2933 = vmatprep.mubr.msk.f32.mxu1 %vm860_vm3, %v2111_v21  ;;  %v2340_v51 = vsel %vm860_vm3, %v2336_v48, %v2309_v34 }
 0xa30   : > { %v3292_v22 = vpop.eup %3291  ;;  %3049 = vmatpush3.bf16.msra.mxu0 %v3046_v28 }
 0xa31   : > { %v2113_v23 = vmul.f32 %v3292_v22, %v3284_v8  ;;  %3051 = vmatprep.subr.bf16.mxu0 %v3050_v31  ;;  %v2295_v39 = vpop.permute.xlu1 %2294  ;;  %v2313_v47 = vpop.permute.xlu0 %2312 }
 0xa32   : > { %v2337_v50 = vsel %vm685_vm1, %v4012_v56, %v2295_v39  ;;  %v2342_v56 = vsel %vm860_vm3, %v2338_v57, %v2313_v47 }
 0xa33   : > { %2934 = vmatmul.mubr.msk.f32.vlgmr.msra.gmra.mrb[22].mxu1 %vm860_vm3, %v2113_v23 }
 0xa34   : > { %3053 = vmatpush3.bf16.msra.mxu0 %v3050_v31 }
 0xa35   : > { %v2311_v40 = vpop.permute.xlu1 %2310 }
 0xa36   : > { %v2341_v53 = vsel %vm860_vm3, %v2337_v50, %v2311_v40 }
 0xa39   : > { %v2299_v41 = vpop.permute.xlu1 %2298 }
 0xa3a   : > { %v2339_v61 = vsel %vm685_vm1, %v4016_v58, %v2299_v41 }
 0xa3d   : > { %v2315_v45 = vpop.permute.xlu1 %2314 }
 0xa3e   : > { %v2343_v63 = vsel %vm860_vm3, %v2339_v61, %v2315_v45 }
 0xb01   : > { %v2928_v32 = vpop.f32.mrb[14].mxu0 }
 0xb02   : > { %2326 = vrot.lane.b32.xlu1 %v2928_v32, %s3566_s17  ;;  %v2192_v33 = vpop.f32.mrb[15].mxu0 }
 0xb03   : > { %2324 = vrot.lane.b32.xlu0 %v2192_v33, %s3566_s17 }
 0xb06   : > { %v2935_v35 = vpop.f32.mrb[22].mxu1 }
 0xb07   : > { %v2279_v36 = vpop.f32.mrb[23].mxu1  ;;  %2330 = vrot.lane.b32.xlu1 %v2935_v35, %s3566_s17 }
 0xb08   : > { %2328 = vrot.lane.b32.xlu0 %v2279_v36, %s3566_s17 }
 0xb74   : > { %v2327_v49 = vpop.permute.xlu1 %2326 }
 0xb75   : > { %v2325_v52 = vpop.permute.xlu0 %2324  ;;  %v2346_v55 = vsel %vm2344_vm4, %v2341_v53, %v2327_v49 }
 0xb76   : > { %v2345_v54 = vsel %vm2344_vm4, %v2340_v51, %v2325_v52 }
 0xb77   : > { %2944 = vmatprep.mubr.msk.f32.mxu0 %vm473_vm0, %v2345_v54 }
 0xb78   : > { %2945 = vmatmul.mubr.msk.f32.vlgmr.msra.gmra.mrb[16].mxu0 %vm473_vm0, %v2346_v55 }
 0xb79   : > { %v2331_v60 = vpop.permute.xlu1 %2330 }
 0xb7a   : > { %v2329_v62 = vpop.permute.xlu0 %2328  ;;  %v2348_v1 = vsel %vm2344_vm4, %v2343_v63, %v2331_v60 }
 0xb7b   : > { %v2347_v0 = vsel %vm2344_vm4, %v2342_v56, %v2329_v62 }
 0xb7c   : > { %2947 = vmatprep.mubr.msk.f32.mxu0 %vm473_vm0, %v2347_v0 }
 0xb7d   : > { %2948 = vmatmul.mubr.msk.f32.gmra.mrb[18].mxu0 %vm473_vm0, %v2348_v1 }
 0xc4b   : > { %v2946_v2 = vpop.f32.mrb[16].mxu0 }
 0xc4c   : > { %v2444_v3 = vadd.f32 %v2946_v2, %v2691_v59  ;;  %v2438_v58 = vpop.f32.mrb[17].mxu0 }
 0xc4d   : > { %v2439_v4 = vadd.f32 %v2691_v59, %v2438_v58 }
 0xc4e   : > { %2458 = vst.msk [vmem:[%s450_s15 + $0x8] sm:$0xff] %vm473_vm0, %v2444_v3 }
 0xc4f   : > { %2457 = vst.msk [vmem:[%s450_s15] sm:$0xff] %vm473_vm0, %v2439_v4 }
 0xc50   : > { %v2949_v5 = vpop.f32.mrb[18].mxu0 }
 0xc51   : > { %v2454_v6 = vadd.f32 %v2949_v5, %v2691_v59  ;;  %v2448_v7 = vpop.f32.mrb[19].mxu0 }
 0xc52   : > { %v2449_v8 = vadd.f32 %v2691_v59, %v2448_v7 }
 0xc53   : > { %2460 = vst.msk [vmem:[%s450_s15 + $0x18] sm:$0xff] %vm473_vm0, %v2454_v6 }
 0xc54   : > { %2459 = vst.msk [vmem:[%s450_s15 + $0x10] sm:$0xff] %vm473_vm0, %v2449_v8 }
 0xc55   : > { %3478 = shalt.err (!%p3475_p8)
}
 0xc56   : > { %s3479_s0 = scalar_lea.hbm %s4158_s16, 512  ;;  %s3483_s25 = scalar_lea.hbm %s4254_s4, 1024 }
 0xc57   : > { %p3480_p11 = scmp.ne.s32.totalorder %s4158_s16, %s3479_s0  ;;  %p3484_p1 = scmp.lt.u32.totalorder %s4158_s16, %s4254_s4 }
 0xc58   : > { %p3485_p2 = scmp.lt.u32.totalorder %s3483_s25, %s3479_s0  ;;  %p3487_p0 = scmp.lt.u32.totalorder %s3479_s0, %s4158_s16 }
 0xc59   : > { %p3481_p7 = pnand %p3480_p11, %p3790_p10 }
 0xc5a   : > { %p3486_p13 = por %p3485_p2, %p3484_p1 }
 0xc5b   : > { %p3482_p12 = pneg %p3481_p7 }
 0xc5c   : > { %p3488_p4 = por %p3487_p0, %p3486_p13 }
 0xc5e   : > { %p3489_p6 = pnand %p3488_p4, %p3482_p12 }
 0xc60   : > { %3492 = shalt.err (!%p3489_p6)
}
 0xc61   : > { %s3568_s24 = smov 128  }
 0xc62   : > { %3074 = dma.vmem_to_hbm [thread:$0]  (%p3790_p10), %s4153_s23, 512, %s4158_s16, %s2462_s18, %s3568_s24, %s3568_s24, %s3564_s9  }
 0xc63 PF: > { %s4255_s30 = sld [smem:[#allocation20_spill]]  ;;  %s4256_s2 = sld [smem:[#allocation21_spill]] }
 0xc64   : > { %p4258_p5 = scmp.ge.s32.totalorder %s3547_s12, 2 }
 0xc69   : > { %s2491_s13 = sand.u32 1, %s4255_s30   ;;  %p4257_p3 = scmp.ne.s32.totalorder %s4256_s2, 0 }
 0xc6a   : > { %s2492_s26 = scalar_lea.sflag [#allocation4], %s2491_s13 }
 0xc6b   : > { %p3097_p9 = pnand %p4258_p5, %p4257_p3 }
 0xc6d   : > { %3530 = dma.done.wait (!%p3097_p9), %s2492_s26, 512  }
 0xc6e   : > { %3532 = vsyncadd (!%p3097_p9), %s2492_s26, 4294966784  ;;  %p27_p8 = scmp.ge.s32.totalorder %s3780_s14, 4   ;;  %s4259_s30 = smov %s3539_s10 }
 0xc6f   : > { %s4260_s10 = smov %s3543_s11  ;;  %s4261_s11 = smov %s3796_s28 }
 0xc70   : > { %s4262_s12 = smov %s3780_s14  ;;  %29 = sbr.rel (!%p27_p8) target bundleno = 14 (0xe), region = 133 }
 0xc77   :  { %2497 = vsyncpa [#allocation3], 1 }
 0xc78   :  { %2499 = vsyncpa [#allocation3 + $0x1], 1 }
 0xc79   :  { %2500 = vsyncpa [#allocation6], 1 }
 0xc7a   :  { %2502 = vsyncpa [#allocation6 + $0x1], 1 }
 0xc7b   :  { %2503 = vsyncpa [#allocation9], 1 }
 0xc7c   :  { %2504 = vsyncpa [#allocation12], 1 }
 0xc7d   :  { %2505 = vsyncpa [#allocation4], 1 }
 0xc7e   :  { %2507 = vsyncpa [#allocation4 + $0x1], 1 }

</bundles_post_ra>
